<compile_context>
chip_gen: v6e
topology: v6e:2x2x1
jax: 0.10.0
libtpu: 0.0.40
codegen_flags: <defaults>
</compile_context>

<pallas_src>
import functools

import numpy as np
import jax
import jax.numpy as jnp
from jax.experimental import pallas as pl
from jax.experimental.pallas import tpu as pltpu


def _resblock_deconv_kernel(x_ref, w1_ref, b1_ref, w2_ref, b2_ref, mask_ref,
                            o_ref, *, shifts):
    # x_ref   : (1, Cin, DHW)    one batch element, spatial flattened into lanes
    # w1_ref  : (Cmid, Cin)      1x1x1 ConvTranspose3d weight, transposed
    # b1_ref  : (Cmid, 1)
    # w2_ref  : (Cin, 27*Cmid)   3x3x3 ConvTranspose3d weight, flipped+flattened
    # b2_ref  : (Cin, 1)
    # mask_ref: (27, DHW)        per-tap validity mask (0 where the shifted
    #                            source voxel falls outside the volume)
    # o_ref   : (1, Cin, DHW)
    dhw = x_ref.shape[-1]

    x = x_ref[0].astype(jnp.float32)                           # (Cin, DHW)

    # activation() -> ConvTranspose3d(in_channel, channel, 1) -> activation()
    h = jnp.maximum(x, 0.0)
    h1 = jnp.dot(w1_ref[...].astype(jnp.float32), h,
                 preferred_element_type=jnp.float32) + b1_ref[...]
    h1 = jnp.maximum(h1, 0.0)                                  # (Cmid, DHW)

    # ConvTranspose3d(channel, in_channel, 3, padding=1), stride 1 -> same size.
    #   out[:, r] = sum_tap W2_tap @ h1[:, r + shift(tap)]   (0 outside volume)
    # Flat-lane shift = pltpu.roll (XLU); wrapped / cross-row lanes are zeroed
    # by the per-tap mask.  All 27 shifted copies are stacked along sublanes
    # and contracted in a single (Cin, 27*Cmid) @ (27*Cmid, DHW) matmul.
    masks = mask_ref[...]                                      # (27, DHW)
    cols = []
    for tap, s in enumerate(shifts):
        if s == 0:
            cols.append(h1)                                    # center tap: mask == 1
        else:
            rolled = pltpu.roll(h1, shift=(-s) % dhw, axis=1)  # rolled[:, r] = h1[:, r + s]
            cols.append(rolled * masks[tap:tap + 1, :])
    stacked = jnp.concatenate(cols, axis=0)                    # (27*Cmid, DHW)

    out = jnp.dot(w2_ref[...].astype(jnp.float32), stacked,
                  preferred_element_type=jnp.float32)
    out = out + b2_ref[...] + x                                # bias + residual add
    o_ref[0] = out.astype(o_ref.dtype)


def resblock_deconv(x_ncdhw, w1_full, b1, w2_full, b2):
    """ResBlockDeconv forward. x_ncdhw: (N, Cin, D, H, W) like PyTorch."""
    N, Cin, D, H, W = x_ncdhw.shape
    Cmid = w1_full.shape[1]
    DHW = D * H * W
    assert DHW % 128 == 0, "flattened spatial volume must be lane-dense"

    # NCDHW is channels-first already: just flatten the spatial volume.
    x_flat = x_ncdhw.reshape(N, Cin, DHW)

    # ConvTranspose3d(Cin, Cmid, 1): h1[cm] = sum_ci x[ci] * W1[ci, cm]
    w1_t = w1_full[:, :, 0, 0, 0].T                            # (Cmid, Cin)

    # ConvTranspose3d(Cmid, Cin, 3, padding=1), stride 1:
    #   out[r] = sum_{o in {-1,0,1}^3} h1[r + o] @ W2[:, :, 1 - o]
    # Pre-flip the kernel, flatten (tap, cm) into one contraction axis, and
    # precompute per-tap flat-lane shifts + boundary masks (static numpy).
    r = np.arange(DHW)
    d_i, h_i, w_i = r // (H * W), (r // W) % H, r % W
    taps, masks, shifts = [], [], []
    for oz in (-1, 0, 1):
        for oy in (-1, 0, 1):
            for ox in (-1, 0, 1):
                taps.append(w2_full[:, :, 1 - oz, 1 - oy, 1 - ox])   # (Cmid, Cin)
                shifts.append(oz * H * W + oy * W + ox)
                valid = ((d_i + oz >= 0) & (d_i + oz < D) &
                         (h_i + oy >= 0) & (h_i + oy < H) &
                         (w_i + ox >= 0) & (w_i + ox < W))
                masks.append(valid.astype(np.float32))
    w2_mat = jnp.concatenate(taps, axis=0).T                   # (Cin, 27*Cmid)
    mask_arr = jnp.asarray(np.stack(masks, axis=0))            # (27, DHW)

    b1_2d = b1.reshape(Cmid, 1)
    b2_2d = b2.reshape(Cin, 1)

    kernel = functools.partial(_resblock_deconv_kernel, shifts=tuple(shifts))

    out_flat = pl.pallas_call(
        kernel,
        out_shape=jax.ShapeDtypeStruct((N, Cin, DHW), x_ncdhw.dtype),
        grid_spec=pltpu.PrefetchScalarGridSpec(
            num_scalar_prefetch=0,
            grid=(N,),
            in_specs=[
                pl.BlockSpec((1, Cin, DHW), lambda n: (n, 0, 0)),
                pl.BlockSpec((Cmid, Cin), lambda n: (0, 0)),
                pl.BlockSpec((Cmid, 1), lambda n: (0, 0)),
                pl.BlockSpec((Cin, 27 * Cmid), lambda n: (0, 0)),
                pl.BlockSpec((Cin, 1), lambda n: (0, 0)),
                pl.BlockSpec((27, DHW), lambda n: (0, 0)),
            ],
            out_specs=pl.BlockSpec((1, Cin, DHW), lambda n: (n, 0, 0)),
        ),
        compiler_params=pltpu.CompilerParams(dimension_semantics=("parallel",)),
    )(x_flat, w1_t, b1_2d, w2_mat, b2_2d, mask_arr)

    return out_flat.reshape(N, Cin, D, H, W)


def resblock_deconv_ref(x, w1_full, b1, w2_full, b2):
    """Pure-JAX reference in NCDHW, mirroring the PyTorch module exactly."""
    N, Cin, D, H, W = x.shape
    h = jnp.maximum(x, 0.0)
    h1 = jnp.einsum('ncdhw,cm->nmdhw', h, w1_full[:, :, 0, 0, 0])
    h1 = jnp.maximum(h1 + b1.reshape(1, -1, 1, 1, 1), 0.0)
    h1p = jnp.pad(h1, ((0, 0), (0, 0), (1, 1), (1, 1), (1, 1)))
    # ConvTranspose (stride 1) == correlation with spatially flipped kernel.
    w2_eq = jnp.flip(w2_full, axis=(2, 3, 4))
    out = jnp.zeros_like(x)
    for tz in range(3):
        for ty in range(3):
            for tx in range(3):
                out = out + jnp.einsum(
                    'nmdhw,mc->ncdhw',
                    h1p[:, :, tz:tz + D, ty:ty + H, tx:tx + W],
                    w2_eq[:, :, tz, ty, tx])
    out = out + b2.reshape(1, -1, 1, 1, 1)
    return out + x


if __name__ == "__main__":
    N, Cin, Cmid = 2, 4, 8
    D = H = W = 8

    key = jax.random.PRNGKey(0)
    kx, k1, k2 = jax.random.split(key, 3)

    x = jax.random.normal(kx, (N, Cin, D, H, W), dtype=jnp.float32)

    # Deterministic xavier_uniform-style init; biases zeroed (as in random_init).
    bnd1 = float(np.sqrt(6.0 / (Cmid * 1 + Cin * 1)))
    w1_full = jax.random.uniform(k1, (Cin, Cmid, 1, 1, 1), jnp.float32, -bnd1, bnd1)
    b1 = jnp.zeros((Cmid,), jnp.float32)

    bnd2 = float(np.sqrt(6.0 / (Cin * 27 + Cmid * 27)))
    w2_full = jax.random.uniform(k2, (Cmid, Cin, 3, 3, 3), jnp.float32, -bnd2, bnd2)
    b2 = jnp.zeros((Cin,), jnp.float32)

    out = resblock_deconv(x, w1_full, b1, w2_full, b2)
    out = jax.block_until_ready(out)

    ref = resblock_deconv_ref(x, w1_full, b1, w2_full, b2)
    np.testing.assert_allclose(np.asarray(out), np.asarray(ref), rtol=1e-4, atol=1e-4)

    print("KERNEL_OK")
</pallas_src>

<mosaic_0001>
module attributes {stable_mosaic.version = 11 : i64} {
  func.func @_resblock_deconv_kernel(%arg0: i32, %arg1: memref<1x4x512xf32, #tpu.memory_space<vmem>>, %arg2: memref<8x4xf32, #tpu.memory_space<vmem>>, %arg3: memref<8x1xf32, #tpu.memory_space<vmem>>, %arg4: memref<4x216xf32, #tpu.memory_space<vmem>>, %arg5: memref<4x1xf32, #tpu.memory_space<vmem>>, %arg6: memref<27x512xf32, #tpu.memory_space<vmem>>, %arg7: memref<1x4x512xf32, #tpu.memory_space<vmem>>) attributes {dimension_semantics = [#tpu.dimension_semantics<parallel>], iteration_bounds = array<i64: 2>, scalar_prefetch = 0 : i64, scratch_operands = 0 : i64, tpu.core_type = #tpu.core_type<tc>, window_params = [{transform_indices = @transform_0, window_bounds = array<i64: 1, 4, 512>}, {pipeline_mode = #tpu.pipeline_mode<synchronous>, transform_indices = @transform_1, window_bounds = array<i64: 8, 4>}, {pipeline_mode = #tpu.pipeline_mode<synchronous>, transform_indices = @transform_2, window_bounds = array<i64: 8, 1>}, {pipeline_mode = #tpu.pipeline_mode<synchronous>, transform_indices = @transform_3, window_bounds = array<i64: 4, 216>}, {pipeline_mode = #tpu.pipeline_mode<synchronous>, transform_indices = @transform_4, window_bounds = array<i64: 4, 1>}, {pipeline_mode = #tpu.pipeline_mode<synchronous>, transform_indices = @transform_5, window_bounds = array<i64: 27, 512>}, {transform_indices = @transform_6, window_bounds = array<i64: 1, 4, 512>}]} {
    %c0 = arith.constant 0 : index
    %c0_0 = arith.constant 0 : index
    %c0_1 = arith.constant 0 : index
    %0 = vector.load %arg1[%c0, %c0_0, %c0_1] : memref<1x4x512xf32, #tpu.memory_space<vmem>>, vector<1x4x512xf32>
    %1 = vector.shape_cast %0 : vector<1x4x512xf32> to vector<4x512xf32>
    %cst = arith.constant 0.000000e+00 : f32
    %2 = vector.broadcast %cst : f32 to vector<4x512xf32>
    %3 = arith.maximumf %1, %2 : vector<4x512xf32>
    %c0_2 = arith.constant 0 : index
    %c0_3 = arith.constant 0 : index
    %4 = vector.load %arg2[%c0_2, %c0_3] : memref<8x4xf32, #tpu.memory_space<vmem>>, vector<8x4xf32>
    %cst_4 = arith.constant dense<0.000000e+00> : vector<8x512xf32>
    %5 = tpu.matmul %4, %3, %cst_4 {dimension_numbers = #tpu.dot_dimension_numbers<[1], [0], [0], [1], [0, 0, 1, 1], [], []>} : vector<8x4xf32>, vector<4x512xf32>, vector<8x512xf32> -> vector<8x512xf32>
    %c0_5 = arith.constant 0 : index
    %c0_6 = arith.constant 0 : index
    %6 = vector.load %arg3[%c0_5, %c0_6] : memref<8x1xf32, #tpu.memory_space<vmem>>, vector<8x1xf32>
    %7 = vector.broadcast %6 : vector<8x1xf32> to vector<8x512xf32>
    %8 = arith.addf %5, %7 : vector<8x512xf32>
    %cst_7 = arith.constant 0.000000e+00 : f32
    %9 = vector.broadcast %cst_7 : f32 to vector<8x512xf32>
    %10 = arith.maximumf %8, %9 : vector<8x512xf32>
    %c0_8 = arith.constant 0 : index
    %c0_9 = arith.constant 0 : index
    %11 = vector.load %arg6[%c0_8, %c0_9] : memref<27x512xf32, #tpu.memory_space<vmem>>, vector<27x512xf32>
    %c73_i32 = arith.constant 73 : i32
    %12 = tpu.dynamic_rotate %10 by %c73_i32 dim 1 : vector<8x512xf32>, i32 -> vector<8x512xf32>
    %13 = vector.extract_strided_slice %11 {offsets = [0, 0], sizes = [1, 512], strides = [1, 1]} : vector<27x512xf32> to vector<1x512xf32>
    %14 = vector.broadcast %13 : vector<1x512xf32> to vector<8x512xf32>
    %15 = arith.mulf %12, %14 : vector<8x512xf32>
    %c72_i32 = arith.constant 72 : i32
    %16 = tpu.dynamic_rotate %10 by %c72_i32 dim 1 : vector<8x512xf32>, i32 -> vector<8x512xf32>
    %17 = vector.extract_strided_slice %11 {offsets = [1, 0], sizes = [1, 512], strides = [1, 1]} : vector<27x512xf32> to vector<1x512xf32>
    %18 = vector.broadcast %17 : vector<1x512xf32> to vector<8x512xf32>
    %19 = arith.mulf %16, %18 : vector<8x512xf32>
    %c71_i32 = arith.constant 71 : i32
    %20 = tpu.dynamic_rotate %10 by %c71_i32 dim 1 : vector<8x512xf32>, i32 -> vector<8x512xf32>
    %21 = vector.extract_strided_slice %11 {offsets = [2, 0], sizes = [1, 512], strides = [1, 1]} : vector<27x512xf32> to vector<1x512xf32>
    %22 = vector.broadcast %21 : vector<1x512xf32> to vector<8x512xf32>
    %23 = arith.mulf %20, %22 : vector<8x512xf32>
    %c65_i32 = arith.constant 65 : i32
    %24 = tpu.dynamic_rotate %10 by %c65_i32 dim 1 : vector<8x512xf32>, i32 -> vector<8x512xf32>
    %25 = vector.extract_strided_slice %11 {offsets = [3, 0], sizes = [1, 512], strides = [1, 1]} : vector<27x512xf32> to vector<1x512xf32>
    %26 = vector.broadcast %25 : vector<1x512xf32> to vector<8x512xf32>
    %27 = arith.mulf %24, %26 : vector<8x512xf32>
    %c64_i32 = arith.constant 64 : i32
    %28 = tpu.dynamic_rotate %10 by %c64_i32 dim 1 : vector<8x512xf32>, i32 -> vector<8x512xf32>
    %29 = vector.extract_strided_slice %11 {offsets = [4, 0], sizes = [1, 512], strides = [1, 1]} : vector<27x512xf32> to vector<1x512xf32>
    %30 = vector.broadcast %29 : vector<1x512xf32> to vector<8x512xf32>
    %31 = arith.mulf %28, %30 : vector<8x512xf32>
    %c63_i32 = arith.constant 63 : i32
    %32 = tpu.dynamic_rotate %10 by %c63_i32 dim 1 : vector<8x512xf32>, i32 -> vector<8x512xf32>
    %33 = vector.extract_strided_slice %11 {offsets = [5, 0], sizes = [1, 512], strides = [1, 1]} : vector<27x512xf32> to vector<1x512xf32>
    %34 = vector.broadcast %33 : vector<1x512xf32> to vector<8x512xf32>
    %35 = arith.mulf %32, %34 : vector<8x512xf32>
    %c57_i32 = arith.constant 57 : i32
    %36 = tpu.dynamic_rotate %10 by %c57_i32 dim 1 : vector<8x512xf32>, i32 -> vector<8x512xf32>
    %37 = vector.extract_strided_slice %11 {offsets = [6, 0], sizes = [1, 512], strides = [1, 1]} : vector<27x512xf32> to vector<1x512xf32>
    %38 = vector.broadcast %37 : vector<1x512xf32> to vector<8x512xf32>
    %39 = arith.mulf %36, %38 : vector<8x512xf32>
    %c56_i32 = arith.constant 56 : i32
    %40 = tpu.dynamic_rotate %10 by %c56_i32 dim 1 : vector<8x512xf32>, i32 -> vector<8x512xf32>
    %41 = vector.extract_strided_slice %11 {offsets = [7, 0], sizes = [1, 512], strides = [1, 1]} : vector<27x512xf32> to vector<1x512xf32>
    %42 = vector.broadcast %41 : vector<1x512xf32> to vector<8x512xf32>
    %43 = arith.mulf %40, %42 : vector<8x512xf32>
    %c55_i32 = arith.constant 55 : i32
    %44 = tpu.dynamic_rotate %10 by %c55_i32 dim 1 : vector<8x512xf32>, i32 -> vector<8x512xf32>
    %45 = vector.extract_strided_slice %11 {offsets = [8, 0], sizes = [1, 512], strides = [1, 1]} : vector<27x512xf32> to vector<1x512xf32>
    %46 = vector.broadcast %45 : vector<1x512xf32> to vector<8x512xf32>
    %47 = arith.mulf %44, %46 : vector<8x512xf32>
    %c9_i32 = arith.constant 9 : i32
    %48 = tpu.dynamic_rotate %10 by %c9_i32 dim 1 : vector<8x512xf32>, i32 -> vector<8x512xf32>
    %49 = vector.extract_strided_slice %11 {offsets = [9, 0], sizes = [1, 512], strides = [1, 1]} : vector<27x512xf32> to vector<1x512xf32>
    %50 = vector.broadcast %49 : vector<1x512xf32> to vector<8x512xf32>
    %51 = arith.mulf %48, %50 : vector<8x512xf32>
    %c8_i32 = arith.constant 8 : i32
    %52 = tpu.dynamic_rotate %10 by %c8_i32 dim 1 : vector<8x512xf32>, i32 -> vector<8x512xf32>
    %53 = vector.extract_strided_slice %11 {offsets = [10, 0], sizes = [1, 512], strides = [1, 1]} : vector<27x512xf32> to vector<1x512xf32>
    %54 = vector.broadcast %53 : vector<1x512xf32> to vector<8x512xf32>
    %55 = arith.mulf %52, %54 : vector<8x512xf32>
    %c7_i32 = arith.constant 7 : i32
    %56 = tpu.dynamic_rotate %10 by %c7_i32 dim 1 : vector<8x512xf32>, i32 -> vector<8x512xf32>
    %57 = vector.extract_strided_slice %11 {offsets = [11, 0], sizes = [1, 512], strides = [1, 1]} : vector<27x512xf32> to vector<1x512xf32>
    %58 = vector.broadcast %57 : vector<1x512xf32> to vector<8x512xf32>
    %59 = arith.mulf %56, %58 : vector<8x512xf32>
    %c1_i32 = arith.constant 1 : i32
    %60 = tpu.dynamic_rotate %10 by %c1_i32 dim 1 : vector<8x512xf32>, i32 -> vector<8x512xf32>
    %61 = vector.extract_strided_slice %11 {offsets = [12, 0], sizes = [1, 512], strides = [1, 1]} : vector<27x512xf32> to vector<1x512xf32>
    %62 = vector.broadcast %61 : vector<1x512xf32> to vector<8x512xf32>
    %63 = arith.mulf %60, %62 : vector<8x512xf32>
    %c511_i32 = arith.constant 511 : i32
    %64 = tpu.dynamic_rotate %10 by %c511_i32 dim 1 : vector<8x512xf32>, i32 -> vector<8x512xf32>
    %65 = vector.extract_strided_slice %11 {offsets = [14, 0], sizes = [1, 512], strides = [1, 1]} : vector<27x512xf32> to vector<1x512xf32>
    %66 = vector.broadcast %65 : vector<1x512xf32> to vector<8x512xf32>
    %67 = arith.mulf %64, %66 : vector<8x512xf32>
    %c505_i32 = arith.constant 505 : i32
    %68 = tpu.dynamic_rotate %10 by %c505_i32 dim 1 : vector<8x512xf32>, i32 -> vector<8x512xf32>
    %69 = vector.extract_strided_slice %11 {offsets = [15, 0], sizes = [1, 512], strides = [1, 1]} : vector<27x512xf32> to vector<1x512xf32>
    %70 = vector.broadcast %69 : vector<1x512xf32> to vector<8x512xf32>
    %71 = arith.mulf %68, %70 : vector<8x512xf32>
    %c504_i32 = arith.constant 504 : i32
    %72 = tpu.dynamic_rotate %10 by %c504_i32 dim 1 : vector<8x512xf32>, i32 -> vector<8x512xf32>
    %73 = vector.extract_strided_slice %11 {offsets = [16, 0], sizes = [1, 512], strides = [1, 1]} : vector<27x512xf32> to vector<1x512xf32>
    %74 = vector.broadcast %73 : vector<1x512xf32> to vector<8x512xf32>
    %75 = arith.mulf %72, %74 : vector<8x512xf32>
    %c503_i32 = arith.constant 503 : i32
    %76 = tpu.dynamic_rotate %10 by %c503_i32 dim 1 : vector<8x512xf32>, i32 -> vector<8x512xf32>
    %77 = vector.extract_strided_slice %11 {offsets = [17, 0], sizes = [1, 512], strides = [1, 1]} : vector<27x512xf32> to vector<1x512xf32>
    %78 = vector.broadcast %77 : vector<1x512xf32> to vector<8x512xf32>
    %79 = arith.mulf %76, %78 : vector<8x512xf32>
    %c457_i32 = arith.constant 457 : i32
    %80 = tpu.dynamic_rotate %10 by %c457_i32 dim 1 : vector<8x512xf32>, i32 -> vector<8x512xf32>
    %81 = vector.extract_strided_slice %11 {offsets = [18, 0], sizes = [1, 512], strides = [1, 1]} : vector<27x512xf32> to vector<1x512xf32>
    %82 = vector.broadcast %81 : vector<1x512xf32> to vector<8x512xf32>
    %83 = arith.mulf %80, %82 : vector<8x512xf32>
    %c456_i32 = arith.constant 456 : i32
    %84 = tpu.dynamic_rotate %10 by %c456_i32 dim 1 : vector<8x512xf32>, i32 -> vector<8x512xf32>
    %85 = vector.extract_strided_slice %11 {offsets = [19, 0], sizes = [1, 512], strides = [1, 1]} : vector<27x512xf32> to vector<1x512xf32>
    %86 = vector.broadcast %85 : vector<1x512xf32> to vector<8x512xf32>
    %87 = arith.mulf %84, %86 : vector<8x512xf32>
    %c455_i32 = arith.constant 455 : i32
    %88 = tpu.dynamic_rotate %10 by %c455_i32 dim 1 : vector<8x512xf32>, i32 -> vector<8x512xf32>
    %89 = vector.extract_strided_slice %11 {offsets = [20, 0], sizes = [1, 512], strides = [1, 1]} : vector<27x512xf32> to vector<1x512xf32>
    %90 = vector.broadcast %89 : vector<1x512xf32> to vector<8x512xf32>
    %91 = arith.mulf %88, %90 : vector<8x512xf32>
    %c449_i32 = arith.constant 449 : i32
    %92 = tpu.dynamic_rotate %10 by %c449_i32 dim 1 : vector<8x512xf32>, i32 -> vector<8x512xf32>
    %93 = vector.extract_strided_slice %11 {offsets = [21, 0], sizes = [1, 512], strides = [1, 1]} : vector<27x512xf32> to vector<1x512xf32>
    %94 = vector.broadcast %93 : vector<1x512xf32> to vector<8x512xf32>
    %95 = arith.mulf %92, %94 : vector<8x512xf32>
    %c448_i32 = arith.constant 448 : i32
    %96 = tpu.dynamic_rotate %10 by %c448_i32 dim 1 : vector<8x512xf32>, i32 -> vector<8x512xf32>
    %97 = vector.extract_strided_slice %11 {offsets = [22, 0], sizes = [1, 512], strides = [1, 1]} : vector<27x512xf32> to vector<1x512xf32>
    %98 = vector.broadcast %97 : vector<1x512xf32> to vector<8x512xf32>
    %99 = arith.mulf %96, %98 : vector<8x512xf32>
    %c447_i32 = arith.constant 447 : i32
    %100 = tpu.dynamic_rotate %10 by %c447_i32 dim 1 : vector<8x512xf32>, i32 -> vector<8x512xf32>
    %101 = vector.extract_strided_slice %11 {offsets = [23, 0], sizes = [1, 512], strides = [1, 1]} : vector<27x512xf32> to vector<1x512xf32>
    %102 = vector.broadcast %101 : vector<1x512xf32> to vector<8x512xf32>
    %103 = arith.mulf %100, %102 : vector<8x512xf32>
    %c441_i32 = arith.constant 441 : i32
    %104 = tpu.dynamic_rotate %10 by %c441_i32 dim 1 : vector<8x512xf32>, i32 -> vector<8x512xf32>
    %105 = vector.extract_strided_slice %11 {offsets = [24, 0], sizes = [1, 512], strides = [1, 1]} : vector<27x512xf32> to vector<1x512xf32>
    %106 = vector.broadcast %105 : vector<1x512xf32> to vector<8x512xf32>
    %107 = arith.mulf %104, %106 : vector<8x512xf32>
    %c440_i32 = arith.constant 440 : i32
    %108 = tpu.dynamic_rotate %10 by %c440_i32 dim 1 : vector<8x512xf32>, i32 -> vector<8x512xf32>
    %109 = vector.extract_strided_slice %11 {offsets = [25, 0], sizes = [1, 512], strides = [1, 1]} : vector<27x512xf32> to vector<1x512xf32>
    %110 = vector.broadcast %109 : vector<1x512xf32> to vector<8x512xf32>
    %111 = arith.mulf %108, %110 : vector<8x512xf32>
    %c439_i32 = arith.constant 439 : i32
    %112 = tpu.dynamic_rotate %10 by %c439_i32 dim 1 : vector<8x512xf32>, i32 -> vector<8x512xf32>
    %113 = vector.extract_strided_slice %11 {offsets = [26, 0], sizes = [1, 512], strides = [1, 1]} : vector<27x512xf32> to vector<1x512xf32>
    %114 = vector.broadcast %113 : vector<1x512xf32> to vector<8x512xf32>
    %115 = arith.mulf %112, %114 : vector<8x512xf32>
    %116 = tpu.concatenate %15, %19, %23, %27, %31, %35, %39, %43, %47, %51, %55, %59, %63, %10, %67, %71 in 0 : vector<8x512xf32>, vector<8x512xf32>, vector<8x512xf32>, vector<8x512xf32>, vector<8x512xf32>, vector<8x512xf32>, vector<8x512xf32>, vector<8x512xf32>, vector<8x512xf32>, vector<8x512xf32>, vector<8x512xf32>, vector<8x512xf32>, vector<8x512xf32>, vector<8x512xf32>, vector<8x512xf32>, vector<8x512xf32> -> vector<128x512xf32>
    %117 = tpu.concatenate %75, %79, %83, %87, %91, %95, %99, %103, %107, %111, %115 in 0 : vector<8x512xf32>, vector<8x512xf32>, vector<8x512xf32>, vector<8x512xf32>, vector<8x512xf32>, vector<8x512xf32>, vector<8x512xf32>, vector<8x512xf32>, vector<8x512xf32>, vector<8x512xf32>, vector<8x512xf32> -> vector<88x512xf32>
    %118 = tpu.concatenate %116, %117 in 0 : vector<128x512xf32>, vector<88x512xf32> -> vector<216x512xf32>
    %c0_10 = arith.constant 0 : index
    %c0_11 = arith.constant 0 : index
    %119 = vector.load %arg4[%c0_10, %c0_11] : memref<4x216xf32, #tpu.memory_space<vmem>>, vector<4x216xf32>
    %cst_12 = arith.constant dense<0.000000e+00> : vector<4x512xf32>
    %120 = tpu.matmul %119, %118, %cst_12 {dimension_numbers = #tpu.dot_dimension_numbers<[1], [0], [0], [1], [0, 0, 1, 1], [], []>} : vector<4x216xf32>, vector<216x512xf32>, vector<4x512xf32> -> vector<4x512xf32>
    %c0_13 = arith.constant 0 : index
    %c0_14 = arith.constant 0 : index
    %121 = vector.load %arg5[%c0_13, %c0_14] : memref<4x1xf32, #tpu.memory_space<vmem>>, vector<4x1xf32>
    %122 = vector.broadcast %121 : vector<4x1xf32> to vector<4x512xf32>
    %123 = arith.addf %120, %122 : vector<4x512xf32>
    %124 = arith.addf %123, %1 : vector<4x512xf32>
    %c0_15 = arith.constant 0 : index
    %c0_16 = arith.constant 0 : index
    %c0_17 = arith.constant 0 : index
    %125 = vector.load %arg7[%c0_15, %c0_16, %c0_17] : memref<1x4x512xf32, #tpu.memory_space<vmem>>, vector<1x4x512xf32>
    %126 = vector.shape_cast %125 : vector<1x4x512xf32> to vector<4x512xf32>
    %127 = vector.shape_cast %124 : vector<4x512xf32> to vector<1x4x512xf32>
    tpu.vector_store %arg7[%c0_15, %c0_16, %c0_17], %127 {strides = array<i32>} : memref<1x4x512xf32, #tpu.memory_space<vmem>>, vector<1x4x512xf32>,
    return
  }
  func.func @transform_0(%arg0: i32) -> (i32, i32, i32) {
    %c0_i32 = arith.constant 0 : i32
    %c0_i32_0 = arith.constant 0 : i32
    %c0_i32_1 = arith.constant 0 : i32
    return %arg0, %c0_i32, %c0_i32_0 : i32, i32, i32
  }
  func.func @transform_1(%arg0: i32) -> (i32, i32) {
    %c0_i32 = arith.constant 0 : i32
    %c0_i32_0 = arith.constant 0 : i32
    %c0_i32_1 = arith.constant 0 : i32
    return %c0_i32, %c0_i32_0 : i32, i32
  }
  func.func @transform_2(%arg0: i32) -> (i32, i32) {
    %c0_i32 = arith.constant 0 : i32
    %c0_i32_0 = arith.constant 0 : i32
    %c0_i32_1 = arith.constant 0 : i32
    return %c0_i32, %c0_i32_0 : i32, i32
  }
  func.func @transform_3(%arg0: i32) -> (i32, i32) {
    %c0_i32 = arith.constant 0 : i32
    %c0_i32_0 = arith.constant 0 : i32
    %c0_i32_1 = arith.constant 0 : i32
    return %c0_i32, %c0_i32_0 : i32, i32
  }
  func.func @transform_4(%arg0: i32) -> (i32, i32) {
    %c0_i32 = arith.constant 0 : i32
    %c0_i32_0 = arith.constant 0 : i32
    %c0_i32_1 = arith.constant 0 : i32
    return %c0_i32, %c0_i32_0 : i32, i32
  }
  func.func @transform_5(%arg0: i32) -> (i32, i32) {
    %c0_i32 = arith.constant 0 : i32
    %c0_i32_0 = arith.constant 0 : i32
    %c0_i32_1 = arith.constant 0 : i32
    return %c0_i32, %c0_i32_0 : i32, i32
  }
  func.func @transform_6(%arg0: i32) -> (i32, i32, i32) {
    %c0_i32 = arith.constant 0 : i32
    %c0_i32_0 = arith.constant 0 : i32
    %c0_i32_1 = arith.constant 0 : i32
    return %arg0, %c0_i32, %c0_i32_0 : i32, i32, i32
  }
}

</mosaic_0001>

<bundles_post_ra>
// kernel: tpu_custom_call.1
= control target key start
LH: loop header
LB: loop body
LE: loop exit
PB: predicated region body
PF: predicated region fallthrough
CT: control target
= control target key end

     0   :  { %s2928_s0 = inlined_call_operand.hbm [shape: f32[2,4,512], index: 0, kind: input, shape index: {}]   ;;  %s2929_s1 = inlined_call_operand.vmem [shape: f32[8,4], index: 1, kind: input, shape index: {}]   ;;  %s2930_s2 = inlined_call_operand.vmem [shape: f32[8,1], index: 2, kind: input, shape index: {}]   ;;  %s2931_s3 = inlined_call_operand.vmem [shape: f32[4,216], index: 3, kind: input, shape index: {}]   ;;  %s2932_s4 = inlined_call_operand.vmem [shape: f32[4,1], index: 4, kind: input, shape index: {}]   ;;  %s2933_s5 = inlined_call_operand.hbm [shape: f32[27,512], index: 5, kind: input, shape index: {}]   ;;  %s2934_s6 = inlined_call_operand.hbm [shape: f32[2,4,512], index: 6, kind: output, shape index: {}]  }
   0x1   :  { %2952 = sst [smem:[#allocation23_spill]] %s2933_s5 }
   0x2   :  { %11 = vsyncpa [#allocation3], 0 }
   0x3   :  { %13 = vsyncpa [#allocation3 + $0x1], 0 }
   0x4   :  { %14 = vsyncpa [#allocation6], 0 }
   0x5   :  { %15 = vsyncpa [#allocation4], 0 }
   0x6   :  { %17 = vsyncpa [#allocation4 + $0x1], 0  ;;  %s1779_s21 = smov 0   ;;  %s1781_s22 = smov 0  }
   0x7   :  { %s1783_s23 = smov 0   ;;  %s1785_s24 = smov 0  }
   0x8 LB: > { %s1800_s25 = sadd.s32 4294967295, %s1718_s24   ;;  %s1485_s26 = sadd.s32 4294967294, %s1718_s24   ;;  %s1718_s24 = sphi %s1785_s24, %s3038_s24   ;;  %s1714_s23 = sphi %s1783_s23, %s3037_s23   ;;  %s1710_s22 = sphi %s1781_s22, %s3036_s22   ;;  %s1706_s21 = sphi %s1779_s21, %s3035_s21  }
   0x9   : > { %p43_p0 = scmp.ne.s32.totalorder %s1710_s22, %s1706_s21  ;;  %p2935_p1 = scmp.eq.s32.totalorder %s1800_s25, 0 }
   0xa   : > { %p178_p3 = scmp.eq.s32.totalorder %s1485_s26, 1  ;;  %p1486_p5 = scmp.ge.s32.totalorder %s1718_s24, 1 }
   0xb   : > { %p1809_p4 = por %p2935_p1, %p43_p0  ;;  %p185_p7 = scmp.lt.s32.totalorder %s1718_s24, 3 }
   0xc   : > { %p1814_p6 = por %p178_p3, %p43_p0  ;;  %s1720_s30 = smov [#allocation5]  }
   0xd   : > { %s2953_s27 = scalar_select %p1809_p4, 1, 0 }
   0xe   : > { %s2954_s28 = scalar_select %p1814_p6, 1, 0 }
   0xf   : > { %p1819_p8 = pnand %p1486_p5, %p185_p7  ;;  %s209_s7 = sshll.u32 %s1720_s30, 4  ;;  %s210_s7 = int_to_ptr.vmem [resolvable:$true] %s209_s7 }
  0x10   : > { %s1833_s9 = sadd.s32 1, %s1718_s24   ;;  %s30_s10 = sadd.s32 1, %s1714_s23 }
  0x11   : > { %s2955_s29 = scalar_select %p1819_p8, 1, 0 }
  0x12   : > { %p1519_p9 = pneg %p1819_p8  ;;  %s27_s11 = ssub.s32 %s1718_s24, %s1833_s9 }
  0x13   : > { %s1607_s12 = scalar_lea.vmem %s210_s7, 2048  ;;  %p1615_p5 = scmp.lt.s32.totalorder %s210_s7, %s210_s7 }
  0x14   : > { %p1828_p11 = pnand %p1519_p9, %p2935_p1  ;;  %p1608_p13 = scmp.ne.s32.totalorder %s210_s7, %s1607_s12 }
  0x15   : > { %p1616_p7 = scmp.lt.s32.totalorder %s1607_s12, %s1607_s12 }
  0x16   : > { %p1598_p12 = pneg %p1828_p11 }
  0x17   : > { %p1617_p10 = por %p1616_p7, %p1615_p5 }
  0x18   : > { %p1610_p0 = pnand %p1608_p13, %p1598_p12 }
  0x1a   : > { %p1611_p3 = pneg %p1610_p0 }
  0x1c   : > { %p1618_p2 = pnand %p1617_p10, %p1611_p3 }
  0x1e   : > { %1621 = shalt.err (!%p1618_p2)
}
  0x1f   : > { %s1721_s13 = smov 512   ;;  %s1722_s14 = smov 32  }
  0x20   : > { %s2957_s5 = sld [smem:[#allocation23_spill]]  ;;  %p28_p9 = scmp.eq.s32.totalorder %s27_s11, 0 }
  0x21   : > { %p37_p12 = scmp.ne.s32.totalorder %s1714_s23, %s1710_s22  ;;  %p38_p10 = scmp.eq.s32.totalorder %s1718_s24, 0 }
  0x22   : > { %p1532_p2 = scmp.lt.s32.totalorder %s1718_s24, 2  ;;  %p2958_p0 = scmp.eq.s32.totalorder %s1800_s25, 1 }
  0x23   : > { %s1850_s17 = scalar_select %p28_p9, %s1714_s23, %s30_s10  }
  0x24   : > { %p39_p13 = por %p38_p10, %p37_p12  ;;  %p1854_p3 = por %p2958_p0, %p37_p12 }
  0x25   : > { %s223_s19 = sand.u32 1, %s1714_s23   ;;  %s1509_s20 = sshll.u32 %s1718_s24, 8 }
  0x26   : > { %1522 = dma.hbm_to_vmem [thread:$0]  (!%p1828_p11), %s2957_s5, 2048, %s210_s7, [#allocation6], %s1721_s13, %s1721_s13, %s1722_s14  }
  0x27   : > { %s2959_s18 = scalar_select %p1854_p3, 1, 0 }
  0x28   : > { %s1489_s26 = sshll.u32 %s223_s19, 4  ;;  %s1863_s12 = scalar_lea.hbm %s2928_s0, %s1509_s20 }
  0x29   : > { %s227_s7 = scalar_lea.vmem [#allocation2], %s1489_s26  ;;  %p1865_p11 = pnand %p1532_p2, %p39_p13 }
  0x2a   : > { %s235_s10 = sshll.u32 %s227_s7, 4  ;;  %s224_s13 = scalar_lea.sflag [#allocation3], %s223_s19  ;;  %s236_s10 = int_to_ptr.vmem [resolvable:$true] %s235_s10 }
  0x2b   : > { %s1622_s14 = scalar_lea.hbm %s1863_s12, 256  ;;  %p1624_p7 = pneg %p1865_p11 }
  0x2c   : > { %p1623_p5 = scmp.ne.s32.totalorder %s1863_s12, %s1622_s14  ;;  %s1627_s20 = scalar_lea.hbm %s2928_s0, 512 }
  0x2d   : > { %p1628_p10 = scmp.lt.s32.totalorder %s1863_s12, %s2928_s0  ;;  %p1629_p2 = scmp.lt.s32.totalorder %s1627_s20, %s1622_s14 }
  0x2e   : > { %p1625_p9 = pnand %p1624_p7, %p1623_p5 }
  0x2f   : > { %p1630_p13 = por %p1629_p2, %p1628_p10 }
  0x30   : > { %p1626_p12 = pneg %p1625_p9 }
  0x32   : > { %p1631_p0 = pnand %p1630_p13, %p1626_p12 }
  0x34   : > { %1634 = shalt.err (!%p1631_p0)
}
  0x35   : > { %s1635_s8 = scalar_lea.vmem %s236_s10, 256  ;;  %s1723_s19 = smov [#allocation2]  }
  0x36   : > { %p1636_p1 = scmp.ne.s32.totalorder %s236_s10, %s1635_s8  ;;  %s1640_s7 = sshll.u32 %s1723_s19, 4  ;;  %s1641_s7 = int_to_ptr.vmem [resolvable:$false] %s1640_s7 }
  0x37   : > { %s1642_s5 = scalar_lea.vmem %s1641_s7, 512  ;;  %p1643_p5 = scmp.lt.s32.totalorder %s236_s10, %s1641_s7 }
  0x38   : > { %p1638_p6 = pnand %p1636_p1, %p1624_p7  ;;  %p1644_p9 = scmp.lt.s32.totalorder %s1642_s5, %s1635_s8 }
  0x3a   : > { %p1639_p3 = pneg %p1638_p6  ;;  %p1645_p4 = por %p1644_p9, %p1643_p5 }
  0x3c   : > { %p1646_p8 = pnand %p1645_p4, %p1639_p3 }
  0x3e   : > { %1649 = shalt.err (!%p1646_p8)
}
  0x3f   : > { %1526 = dma.hbm_to_vmem [thread:$0]  (!%p1865_p11), %s1863_s12, 256, %s236_s10, %s224_s13  }
  0x40   : > { %p2961_p12 = scmp.ne.s32.totalorder %s2955_s29, 0 }
  0x42   : > { %244 = sbr.rel (%p2961_p12) target bundleno = 759 (0x2f7), region = 44 }
  0x47   : > { %s1886_s14 = sand.u32 1, %s1710_s22   ;;  %p2962_p1 = scmp.ne.s32.totalorder %s2953_s27, 0 }
  0x48   : > { %s1493_s15 = sshll.u32 %s1886_s14, 4  ;;  %s247_s16 = scalar_lea.sflag [#allocation3], %s1886_s14 }
  0x49   : > { %s1892_s5 = scalar_lea.vmem [#allocation2], %s1493_s15 }
  0x4a   : > { %1693 = dma.done.wait (%p2962_p1), %s247_s16, 256  }
  0x4b   : > { %1695 = vsyncadd (%p2962_p1), %s247_s16, 4294967040  ;;  %p2963_p4 = scmp.eq.s32.totalorder %s1800_s25, 0 }
  0x4d   : > { %1697 = dma.done.wait (%p2963_p4), [#allocation6], 2048   ;;  %p2964_p6 = pmov %p2963_p4 }
  0x4e   : > { %v1724_v0 = vmov 0.0   ;;  %v1725_v1 = vmov 0   ;;  %v283_v2 = vld [vmem:[%s1892_s5] sm:$0xff]  ;;  %v284_v3 = vld [vmem:[%s1892_s5 + $0x8] sm:$0xff]  ;;  %vm302_vm0 = vcmask 1043456   ;;  %vm298_vm1 = vcmask 31744  }
  0x4f   : > { %1699 = vsyncadd (%p2964_p6), [#allocation6], 4294965248  ;;  %375 = vmatprep.mubr.f32.mxu0 %v1724_v0  ;;  %446 = vmatprep.mubr.f32.mxu1 %v1724_v0  ;;  %v285_v4 = vmax.f32 %v283_v2, 0.0  ;;  %v286_v5 = vmax.f32 %v284_v3, 0.0  ;;  %v288_v6 = vld [vmem:[%s2930_s2] sm:$0xff]  ;;  %s1726_s11 = smov 121   ;;  %v481_v23 = vlaneseq }
  0x50   : > { %1589 = vset.pattern.permute.xlu0 %v1725_v1  ;;  %1590 = vset.pattern.permute.xlu1 %v1725_v1  ;;  %v287_v9 = vld [vmem:[%s2929_s1] sm:$0xff]  ;;  %s1727_s13 = smov 127   ;;  %s1728_s20 = smov 1   ;;  %v1987_v27 = vld [vmem:[#allocation5 + $0x30] sm:$0xff]  ;;  %v1989_v28 = vld [vmem:[#allocation5 + $0x38] sm:$0xff]  ;;  %vm1225_vm5 = vcmask 719872  }
  0x51   : > { %291 = vperm.xlu0 %1589, %v288_v6   ;;  %v296_v7 = vcombine.high %v285_v4, %v285_v4  ;;  %v297_v8 = vcombine.high %v286_v5, %v286_v5  ;;  %s1729_s30 = smov 7   ;;  %s1730_s26 = smov 8   ;;  %v1978_v24 = vshrl.u32 %v481_v23, 7  ;;  %v1982_v25 = vand.u32 127, %v481_v23  ;;  %v2031_v48 = vld [vmem:[%s2931_s3] sm:$0xff] }
  0x52   : > { %s1731_s8 = smov 9   ;;  %s1732_s19 = smov 55   ;;  %2965 = vst [vmem:[#allocation11_spill] sm:$0xff] %v2031_v48  ;;  %v1224_v51 = vcombine.high %v2031_v48, %v2031_v48  ;;  %v1217_v60 = vld [vmem:[%s2932_s4] sm:$0xf] }
  0x53   : > { %1496 = vmatprep.subr.msk.mxu0 %vm302_vm0, %v296_v7  ;;  %1499 = vmatprep.subr.msk.mxu1 %vm302_vm0, %v297_v8  ;;  %s1733_s7 = smov 56   ;;  %s1734_s16 = smov 57   ;;  %v1985_v26 = vsub.s32 7, %v1978_v24  ;;  %vm945_vm2 = vcmp.lt.s32.totalorder %v1982_v25, 121  ;;  %vm912_vm3 = vcmp.lt.s32.totalorder %v1982_v25, 127  ;;  %v2012_v40 = vsub.s32 6, %v1978_v24 }
  0x54   : > { %1497 = vmatpush1.msk.msra.mxu0 %vm302_vm0, %v285_v4  ;;  %1500 = vmatpush1.msk.msra.mxu1 %vm302_vm0, %v286_v5  ;;  %s1735_s27 = smov 63   ;;  %s1736_s29 = smov 64   ;;  %vm879_vm4 = vcmp.lt.s32.totalorder %v1982_v25, 1  ;;  %v2043_v54 = vsub.s32 4, %v1978_v24  ;;  %vm846_vm6 = vcmp.lt.s32.totalorder %v1982_v25, 7  ;;  %v2070_v4 = vsub.s32 3, %v1978_v24 }
  0x55   : > { %1498 = vmatmul.mubr.msk.f32.vlgmr.msra.gmra.mxu0 %vm298_vm1, %v287_v9  ;;  %1501 = vmatmul.mubr.msk.f32.vlgmr.msra.gmra.mxu1 %vm298_vm1, %v287_v9  ;;  %s1737_s12 = smov 65   ;;  %s1738_s10 = smov 71   ;;  %v961_v31 = vrot.slane %v1987_v27, %v1985_v26  ;;  %v965_v32 = vrot.slane %v1989_v28, %v1985_v26  ;;  %v928_v44 = vrot.slane %v1987_v27, %v2012_v40  ;;  %vm813_vm7 = vcmp.lt.s32.totalorder %v1982_v25, 8 }
  0x56   : > { %v932_v45 = vrot.slane %v1989_v28, %v2012_v40  ;;  %1502 = vmatprep.mubr.msk.f32.mxu0 %vm1225_vm5, %v1224_v51  ;;  %1503 = vmatprep.mubr.msk.f32.mxu1 %vm1225_vm5, %v1224_v51  ;;  %v899_v58 = vrot.slane %v1989_v28, %v2043_v54  ;;  %v895_v59 = vrot.slane %v1987_v27, %v2043_v54  ;;  %vm780_vm8 = vcmp.lt.s32.totalorder %v1982_v25, 9  ;;  %p3032_p3 = scmp.ne.s32.totalorder %s2959_s18, 0 }
  0x57   : > { %v866_v8 = vrot.slane %v1989_v28, %v2070_v4  ;;  %v862_v9 = vrot.slane %v1987_v27, %v2070_v4  ;;  %vm747_vm9 = vcmp.lt.s32.totalorder %v1982_v25, 55  ;;  %vm714_vm10 = vcmp.lt.s32.totalorder %v1982_v25, 56 }
  0x58   : > { %vm681_vm11 = vcmp.lt.s32.totalorder %v1982_v25, 57  ;;  %vm648_vm12 = vcmp.lt.s32.totalorder %v1982_v25, 63  ;;  %vm615_vm13 = vcmp.lt.s32.totalorder %v1982_v25, 64  ;;  %vm582_vm14 = vcmp.lt.s32.totalorder %v1982_v25, 65 }
  0x59   : > { %vm549_vm15 = vcmp.lt.s32.totalorder %v1982_v25, 71  ;;  %vm516_vm0 = vcmp.lt.s32.totalorder %v1982_v25, 72  ;;  %vm483_vm1 = vcmp.lt.s32.totalorder %v1982_v25, 73 }
  0xcc   : > { %v292_v10 = vpop.permute.xlu0 %291 }
 0x115   : > { %v377_v11 = vpop.f32.mrf.mxu0  ;;  %v448_v12 = vpop.f32.mrf.mxu1 }
 0x116   : > { %v378_v13 = vadd.f32 %v377_v11, %v292_v10  ;;  %v449_v14 = vadd.f32 %v448_v12, %v292_v10 }
 0x117   : > { %v450_v15 = vpop.f32.mrf.mxu1  ;;  %v379_v19 = vpop.f32.mrf.mxu0 }
 0x118   : > { %v1910_v16 = vmax.f32 %v378_v13, 0.0  ;;  %v1912_v17 = vmax.f32 %v449_v14, 0.0  ;;  %v451_v18 = vadd.f32 %v450_v15, %v292_v10  ;;  %v380_v20 = vadd.f32 %v379_v19, %v292_v10 }
 0x11a   : > { %941 = vrot.lane.b32.xlu1 %v1912_v17, %s1726_s11  ;;  %937 = vrot.lane.b32.xlu0 %v1910_v16, %s1726_s11  ;;  %v1918_v21 = vmax.f32 %v451_v18, 0.0  ;;  %v1923_v22 = vmax.f32 %v380_v20, 0.0  ;;  %v2083_v18 = vsub.s32 2, %v1978_v24 }
 0x11c   : > { %v829_v23 = vrot.slane %v1987_v27, %v2083_v18 }
 0x11e   : > { %904 = vrot.lane.b32.xlu1 %v1910_v16, %s1727_s13  ;;  %943 = vrot.lane.b32.xlu0 %v1918_v21, %s1726_s11 }
 0x122   : > { %908 = vrot.lane.b32.xlu1 %v1912_v17, %s1727_s13  ;;  %906 = vrot.lane.b32.xlu0 %v1923_v22, %s1727_s13 }
 0x126   : > { %871 = vrot.lane.b32.xlu1 %v1910_v16, %s1728_s20  ;;  %910 = vrot.lane.b32.xlu0 %v1918_v21, %s1727_s13  ;;  %s1740_s13 = smov 73  }
 0x12a   : > { %875 = vrot.lane.b32.xlu1 %v1912_v17, %s1728_s20  ;;  %873 = vrot.lane.b32.xlu0 %v1923_v22, %s1728_s20 }
 0x12e   : > { %838 = vrot.lane.b32.xlu1 %v1910_v16, %s1729_s30  ;;  %877 = vrot.lane.b32.xlu0 %v1918_v21, %s1728_s20  ;;  %s1741_s20 = smov 119  }
 0x132   : > { %842 = vrot.lane.b32.xlu1 %v1912_v17, %s1729_s30  ;;  %840 = vrot.lane.b32.xlu0 %v1923_v22, %s1729_s30 }
 0x136   : > { %805 = vrot.lane.b32.xlu1 %v1910_v16, %s1730_s26  ;;  %844 = vrot.lane.b32.xlu0 %v1918_v21, %s1729_s30 }
 0x13a   : > { %809 = vrot.lane.b32.xlu1 %v1912_v17, %s1730_s26  ;;  %807 = vrot.lane.b32.xlu0 %v1923_v22, %s1730_s26 }
 0x13e   : > { %772 = vrot.lane.b32.xlu1 %v1910_v16, %s1731_s8  ;;  %811 = vrot.lane.b32.xlu0 %v1918_v21, %s1730_s26 }
 0x142   : > { %776 = vrot.lane.b32.xlu1 %v1912_v17, %s1731_s8  ;;  %774 = vrot.lane.b32.xlu0 %v1923_v22, %s1731_s8 }
 0x146   : > { %739 = vrot.lane.b32.xlu1 %v1910_v16, %s1732_s19  ;;  %778 = vrot.lane.b32.xlu0 %v1918_v21, %s1731_s8  ;;  %s1742_s8 = smov 120  }
 0x14a   : > { %743 = vrot.lane.b32.xlu1 %v1912_v17, %s1732_s19  ;;  %741 = vrot.lane.b32.xlu0 %v1923_v22, %s1732_s19 }
 0x14e   : > { %706 = vrot.lane.b32.xlu1 %v1910_v16, %s1733_s7  ;;  %745 = vrot.lane.b32.xlu0 %v1918_v21, %s1732_s19 }
 0x152   : > { %710 = vrot.lane.b32.xlu1 %v1912_v17, %s1733_s7  ;;  %708 = vrot.lane.b32.xlu0 %v1923_v22, %s1733_s7 }
 0x156   : > { %673 = vrot.lane.b32.xlu1 %v1910_v16, %s1734_s16  ;;  %712 = vrot.lane.b32.xlu0 %v1918_v21, %s1733_s7 }
 0x15a   : > { %677 = vrot.lane.b32.xlu1 %v1912_v17, %s1734_s16  ;;  %675 = vrot.lane.b32.xlu0 %v1923_v22, %s1734_s16 }
 0x15e   : > { %640 = vrot.lane.b32.xlu1 %v1910_v16, %s1735_s27  ;;  %679 = vrot.lane.b32.xlu0 %v1918_v21, %s1734_s16  ;;  %s1510_s16 = sshll.u32 %s1800_s25, 8  ;;  %s1743_s25 = smov [#allocation7]  }
 0x162   : > { %644 = vrot.lane.b32.xlu1 %v1912_v17, %s1735_s27  ;;  %642 = vrot.lane.b32.xlu0 %v1923_v22, %s1735_s27 }
 0x166   : > { %607 = vrot.lane.b32.xlu1 %v1910_v16, %s1736_s29  ;;  %646 = vrot.lane.b32.xlu0 %v1918_v21, %s1735_s27  ;;  %s282_s27 = scalar_lea.vmem [#allocation7], %s1493_s15  ;;  %s1654_s15 = sshll.u32 %s1743_s25, 4  ;;  %s1655_s15 = int_to_ptr.vmem [resolvable:$false] %s1654_s15 }
 0x16a   : > { %611 = vrot.lane.b32.xlu1 %v1912_v17, %s1736_s29  ;;  %609 = vrot.lane.b32.xlu0 %v1923_v22, %s1736_s29 }
 0x16e   : > { %939 = vrot.lane.b32.xlu1 %v1923_v22, %s1726_s11  ;;  %613 = vrot.lane.b32.xlu0 %v1918_v21, %s1736_s29  ;;  %s1739_s11 = smov 72   ;;  %s1405_s29 = sshll.u32 %s282_s27, 4  ;;  %s1406_s29 = int_to_ptr.vmem [resolvable:$true] %s1405_s29 }
 0x16f   : > { %p1657_p10 = scmp.lt.s32.totalorder %s1406_s29, %s1655_s15 }
 0x172   : > { %574 = vrot.lane.b32.xlu1 %v1910_v16, %s1737_s12  ;;  %576 = vrot.lane.b32.xlu0 %v1923_v22, %s1737_s12 }
 0x176   : > { %578 = vrot.lane.b32.xlu1 %v1912_v17, %s1737_s12  ;;  %580 = vrot.lane.b32.xlu0 %v1918_v21, %s1737_s12 }
 0x17a   : > { %541 = vrot.lane.b32.xlu1 %v1910_v16, %s1738_s10  ;;  %543 = vrot.lane.b32.xlu0 %v1923_v22, %s1738_s10 }
 0x17e   : > { %545 = vrot.lane.b32.xlu1 %v1912_v17, %s1738_s10  ;;  %547 = vrot.lane.b32.xlu0 %v1918_v21, %s1738_s10 }
 0x182   : > { %508 = vrot.lane.b32.xlu1 %v1910_v16, %s1739_s11  ;;  %510 = vrot.lane.b32.xlu0 %v1923_v22, %s1739_s11 }
 0x186   : > { %512 = vrot.lane.b32.xlu1 %v1912_v17, %s1739_s11  ;;  %514 = vrot.lane.b32.xlu0 %v1918_v21, %s1739_s11  ;;  %s1391_s11 = scalar_lea.sflag [#allocation4], %s1886_s14 }
 0x18a   : > { %473 = vrot.lane.b32.xlu1 %v1910_v16, %s1740_s13  ;;  %475 = vrot.lane.b32.xlu0 %v1923_v22, %s1740_s13 }
 0x18c   : > { %v1991_v29 = vpop.permute.xlu1 %941  ;;  %v1993_v30 = vpop.permute.xlu0 %937 }
 0x18e   : > { %477 = vrot.lane.b32.xlu1 %v1912_v17, %s1740_s13  ;;  %479 = vrot.lane.b32.xlu0 %v1918_v21, %s1740_s13  ;;  %s1650_s13 = scalar_lea.vmem %s1406_s29, 256 }
 0x18f   : > { %p1651_p8 = scmp.ne.s32.totalorder %s1406_s29, %s1650_s13 }
 0x190   : > { %v905_v33 = vpop.permute.xlu1 %904  ;;  %v944_v34 = vpop.permute.xlu0 %943 }
 0x191   : > { %v946_v35 = vsel %vm945_vm2, %v1991_v29, %v944_v34  ;;  %v949_v36 = vsel %vm945_vm2, %v944_v34, %v1993_v30  ;;  %p1652_p11 = pnand %p1651_p8, %p3032_p3 }
 0x192   : > { %v968_v37 = vmul.f32 %v961_v31, %v946_v35  ;;  %v969_v38 = vmul.f32 %v965_v32, %v949_v36  ;;  %1003 = vrot.lane.b32.xlu1 %v1910_v16, %s1741_s20  ;;  %1005 = vrot.lane.b32.xlu0 %v1923_v22, %s1741_s20 }
 0x193   : > { %p1653_p7 = pneg %p1652_p11 }
 0x194   : > { %v909_v39 = vpop.permute.xlu1 %908  ;;  %1299 = vmatprep.subr.mxu1 %v969_v38  ;;  %v907_v41 = vpop.permute.xlu0 %906 }
 0x195   : > { %v2016_v42 = vsel %vm912_vm3, %v907_v41, %v909_v39  ;;  %v2020_v43 = vsel %vm912_vm3, %v905_v33, %v907_v41  ;;  %1300 = vmatpush1.msra.mxu1 %v968_v37  ;;  %v2103_v37 = vsub.s32 1, %v1978_v24 }
 0x196   : > { %1007 = vrot.lane.b32.xlu1 %v1912_v17, %s1741_s20  ;;  %1009 = vrot.lane.b32.xlu0 %v1918_v21, %s1741_s20  ;;  %s1656_s20 = scalar_lea.vmem %s1655_s15, 512 }
 0x197   : > { %v800_v41 = vrot.slane %v1989_v28, %v2103_v37  ;;  %p1658_p2 = scmp.lt.s32.totalorder %s1656_s20, %s1650_s13 }
 0x198   : > { %v872_v46 = vpop.permute.xlu1 %871  ;;  %v911_v47 = vpop.permute.xlu0 %910 }
 0x199   : > { %v913_v49 = vsel %vm912_vm3, %v909_v39, %v911_v47  ;;  %v916_v50 = vsel %vm912_vm3, %v911_v47, %v905_v33  ;;  %vm978_vm3 = vcmp.lt.s32.totalorder %v1982_v25, 120  ;;  %p1659_p13 = por %p1658_p2, %p1657_p10 }
 0x19a   : > { %v935_v52 = vmul.f32 %v928_v44, %v913_v49  ;;  %v936_v53 = vmul.f32 %v932_v45, %v916_v50  ;;  %970 = vrot.lane.b32.xlu1 %v1910_v16, %s1742_s8  ;;  %972 = vrot.lane.b32.xlu0 %v1923_v22, %s1742_s8  ;;  %v796_v44 = vrot.slane %v1987_v27, %v2103_v37 }
 0x19b   : > { %p1660_p0 = pnand %p1659_p13, %p1653_p7 }
 0x19c   : > { %v876_v55 = vpop.permute.xlu1 %875  ;;  %1301 = vmatprep.subr.mxu1 %v936_v53  ;;  %v874_v56 = vpop.permute.xlu0 %873 }
 0x19d   : > { %v2047_v57 = vsel %vm879_vm4, %v872_v46, %v874_v56  ;;  %1302 = vmatpush1.msra.mxu1 %v935_v52  ;;  %v881_v61 = vsel %vm879_vm4, %v874_v56, %v876_v55  ;;  %v2123_v52 = vsub.s32 0, %v1978_v24 }
 0x19e   : > { %974 = vrot.lane.b32.xlu1 %v1912_v17, %s1742_s8  ;;  %976 = vrot.lane.b32.xlu0 %v1918_v21, %s1742_s8  ;;  %v902_v3 = vmul.f32 %v895_v59, %v881_v61 }
 0x19f   : > { %1303 = vmatprep.subr.mxu1 %v1918_v21  ;;  %v833_v21 = vrot.slane %v1989_v28, %v2083_v18  ;;  %v767_v56 = vrot.slane %v1989_v28, %v2123_v52 }
 0x1a0   : > { %1304 = vmatpush1.msra.mxu1 %v1912_v17  ;;  %v839_v62 = vpop.permute.xlu1 %838  ;;  %v878_v63 = vpop.permute.xlu0 %877 }
 0x1a1   : > { %v880_v0 = vsel %vm879_vm4, %v876_v55, %v878_v63  ;;  %v2066_v1 = vsel %vm879_vm4, %v878_v63, %v872_v46 }
 0x1a2   : > { %v903_v2 = vmul.f32 %v899_v58, %v880_v0  ;;  %1220 = vperm.xlu1 %1590, %v1217_v60   ;;  %v763_v58 = vrot.slane %v1987_v27, %v2123_v52  ;;  %v2148_v0 = vld [vmem:[#allocation5 + $0x18] sm:$0xff] }
 0x1a4   : > { %v843_v5 = vpop.permute.xlu1 %842  ;;  %1305 = vmatprep.subr.mxu1 %v903_v2  ;;  %v841_v6 = vpop.permute.xlu0 %840  ;;  %v2150_v2 = vld [vmem:[#allocation5 + $0x10] sm:$0xff] }
 0x1a5   : > { %v2072_v7 = vsel %vm846_vm6, %v839_v62, %v841_v6  ;;  %1306 = vmatpush1.msra.mxu1 %v902_v3  ;;  %v848_v10 = vsel %vm846_vm6, %v841_v6, %v843_v5  ;;  %v730_v6 = vrot.slane %v2150_v2, %v1985_v26 }
 0x1a6   : > { %v869_v17 = vmul.f32 %v862_v9, %v848_v10 }
 0x1a8   : > { %v2078_v11 = vpop.permute.xlu1 %805  ;;  %v845_v12 = vpop.permute.xlu0 %844 }
 0x1a9   : > { %v847_v13 = vsel %vm846_vm6, %v843_v5, %v845_v12  ;;  %v2080_v14 = vsel %vm846_vm6, %v845_v12, %v839_v62  ;;  %v734_v5 = vrot.slane %v2148_v0, %v1985_v26 }
 0x1aa   : > { %v870_v15 = vmul.f32 %v866_v8, %v847_v13 }
 0x1ac   : > { %v810_v19 = vpop.permute.xlu1 %809  ;;  %1307 = vmatprep.subr.mxu1 %v870_v15  ;;  %v2085_v20 = vpop.permute.xlu0 %807 }
 0x1ad   : > { %1308 = vmatpush1.msra.mxu1 %v869_v17  ;;  %v815_v31 = vsel %vm813_vm7, %v2085_v20, %v810_v19 }
 0x1ae   : > { %v836_v36 = vmul.f32 %v829_v23, %v815_v31  ;;  %v697_v23 = vrot.slane %v2150_v2, %v2012_v40 }
 0x1b0   : > { %v2095_v32 = vpop.permute.xlu1 %772  ;;  %v2097_v33 = vpop.permute.xlu0 %811 }
 0x1b1   : > { %v814_v34 = vsel %vm813_vm7, %v810_v19, %v2097_v33 }
 0x1b2   : > { %v837_v35 = vmul.f32 %v833_v21, %v814_v34  ;;  %v701_v21 = vrot.slane %v2148_v0, %v2012_v40 }
 0x1b4   : > { %v777_v38 = vpop.permute.xlu1 %776  ;;  %1309 = vmatprep.subr.mxu1 %v837_v35  ;;  %v2105_v39 = vpop.permute.xlu0 %774 }
 0x1b5   : > { %1310 = vmatpush1.msra.mxu1 %v836_v36  ;;  %v782_v45 = vsel %vm780_vm8, %v2105_v39, %v777_v38 }
 0x1b6   : > { %v803_v51 = vmul.f32 %v796_v44, %v782_v45  ;;  %v2199_v44 = vsub.s32 5, %v1978_v24 }
 0x1b8   : > { %v2115_v46 = vpop.permute.xlu1 %739  ;;  %v2117_v47 = vpop.permute.xlu0 %778 }
 0x1b9   : > { %v781_v49 = vsel %vm780_vm8, %v777_v38, %v2117_v47 }
 0x1ba   : > { %v804_v50 = vmul.f32 %v800_v41, %v781_v49 }
 0x1bc   : > { %v744_v53 = vpop.permute.xlu1 %743  ;;  %1311 = vmatprep.subr.mxu1 %v804_v50  ;;  %v2125_v55 = vpop.permute.xlu0 %741  ;;  %v668_v50 = vrot.slane %v2148_v0, %v2199_v44 }
 0x1bd   : > { %1312 = vmatpush1.msra.mxu1 %v803_v51  ;;  %v2135_v59 = vsel %vm747_vm9, %v2125_v55, %v744_v53  ;;  %v664_v51 = vrot.slane %v2150_v2, %v2199_v44 }
 0x1be   : > { %2966 = vst [vmem:[#allocation12_spill] sm:$0xff] %v2135_v59  ;;  %v770_v28 = vmul.f32 %v763_v58, %v2135_v59 }
 0x1c0   : > { %v2137_v60 = vpop.permute.xlu1 %706  ;;  %v2139_v61 = vpop.permute.xlu0 %745 }
 0x1c1   : > { %v2144_v62 = vsel %vm747_vm9, %v744_v53, %v2139_v61  ;;  %v2208_v53 = vld [vmem:[#allocation5 + $0x20] sm:$0xff] }
 0x1c2   : > { %2967 = vst [vmem:[#allocation13_spill] sm:$0xff] %v2144_v62  ;;  %v771_v63 = vmul.f32 %v767_v56, %v2144_v62 }
 0x1c4   : > { %v711_v27 = vpop.permute.xlu1 %710  ;;  %1313 = vmatprep.subr.mxu1 %v771_v63  ;;  %v2152_v3 = vpop.permute.xlu0 %708  ;;  %v2219_v63 = vld [vmem:[#allocation5 + $0x28] sm:$0xff] }
 0x1c5   : > { %1314 = vmatpush1.msra.mxu1 %v770_v28  ;;  %v2162_v8 = vsel %vm714_vm10, %v2152_v3, %v711_v27 }
 0x1c6   : > { %2968 = vst [vmem:[#allocation14_spill] sm:$0xff] %v2162_v8  ;;  %v737_v15 = vmul.f32 %v730_v6, %v2162_v8 }
 0x1c8   : > { %v2164_v9 = vpop.permute.xlu1 %673  ;;  %v2166_v10 = vpop.permute.xlu0 %712 }
 0x1c9   : > { %v2171_v12 = vsel %vm714_vm10, %v711_v27, %v2166_v10 }
 0x1ca   : > { %2969 = vst [vmem:[#allocation15_spill] sm:$0xff] %v2171_v12  ;;  %v738_v13 = vmul.f32 %v734_v5, %v2171_v12  ;;  %v920_v5 = vrot.slane %v2208_v53, %v2012_v40  ;;  %v2277_v12 = vld [vmem:[#allocation5 + $0x8] sm:$0xff] }
 0x1cc   : > { %v678_v17 = vpop.permute.xlu1 %677  ;;  %1315 = vmatprep.subr.mxu1 %v738_v13  ;;  %v2175_v19 = vpop.permute.xlu0 %675  ;;  %v924_v13 = vrot.slane %v2219_v63, %v2012_v40 }
 0x1cd   : > { %1316 = vmatpush1.msra.mxu1 %v737_v15  ;;  %v2185_v31 = vsel %vm681_vm11, %v2175_v19, %v678_v17  ;;  %v2248_v15 = vld [vmem:[#allocation5 + $0x68] sm:$0x7] }
 0x1ce   : > { %2970 = vst [vmem:[#allocation16_spill] sm:$0xff] %v2185_v31  ;;  %v704_v41 = vmul.f32 %v697_v23, %v2185_v31  ;;  %v2238_v23 = vld [vmem:[#allocation5 + $0x60] sm:$0x7] }
 0x1d0   : > { %v2187_v34 = vpop.permute.xlu1 %640  ;;  %v2189_v35 = vpop.permute.xlu0 %679 }
 0x1d1   : > { %v2194_v36 = vsel %vm681_vm11, %v678_v17, %v2189_v35  ;;  %v2250_v17 = vld [vmem:[#allocation5 + $0x70] sm:$0x7] }
 0x1d2   : > { %2971 = vst [vmem:[#allocation17_spill] sm:$0xff] %v2194_v36  ;;  %v705_v38 = vmul.f32 %v701_v21, %v2194_v36  ;;  %v2255_v21 = vld [vmem:[#allocation5 + $0x78] sm:$0x7] }
 0x1d4   : > { %v645_v45 = vpop.permute.xlu1 %644  ;;  %1317 = vmatprep.subr.mxu1 %v705_v38  ;;  %v2201_v49 = vpop.permute.xlu0 %642 }
 0x1d5   : > { %1318 = vmatpush1.msra.mxu1 %v704_v41  ;;  %v2213_v24 = vsel %vm648_vm12, %v2201_v49, %v645_v45 }
 0x1d6   : > { %2972 = vst [vmem:[#allocation18_spill] sm:$0xff] %v2213_v24  ;;  %v671_v6 = vmul.f32 %v664_v51, %v2213_v24  ;;  %v635_v51 = vrot.slane %v2148_v0, %v2043_v54  ;;  %v2288_v24 = vld [vmem:[#allocation5] sm:$0xff] }
 0x1d7   : > { %v722_v59 = vrot.slane %v2288_v24, %v1985_v26 }
 0x1d8   : > { %v2215_v56 = vpop.permute.xlu1 %607  ;;  %v2217_v58 = vpop.permute.xlu0 %646 }
 0x1d9   : > { %2973 = vst [vmem:[#allocation19_spill] sm:$0xff] %v2215_v56  ;;  %2974 = vst [vmem:[#allocation20_spill] sm:$0xff] %v2217_v58  ;;  %v2224_v28 = vsel %vm648_vm12, %v645_v45, %v2217_v58  ;;  %v953_v45 = vrot.slane %v2208_v53, %v1985_v26  ;;  %v726_v58 = vrot.slane %v2277_v12, %v1985_v26 }
 0x1da   : > { %2975 = vst [vmem:[#allocation21_spill] sm:$0xff] %v2224_v28  ;;  %v672_v27 = vmul.f32 %v668_v50, %v2224_v28  ;;  %v957_v50 = vrot.slane %v2219_v63, %v1985_v26  ;;  %v631_v28 = vrot.slane %v2150_v2, %v2043_v54 }
 0x1dc   : > { %v612_v38 = vpop.permute.xlu1 %611  ;;  %1319 = vmatprep.subr.mxu1 %v672_v27  ;;  %v2240_v41 = vpop.permute.xlu0 %609 }
 0x1dd   : > { %2976 = vst [vmem:[#allocation22_spill] sm:$0xff] %v2240_v41  ;;  %1320 = vmatpush1.msra.mxu1 %v671_v6  ;;  %v2282_v6 = vsel %vm615_vm13, %v2240_v41, %v612_v38 }
 0x1e0   : > { %v940_v27 = vpop.permute.xlu1 %939  ;;  %v2284_v48 = vpop.permute.xlu0 %613 }
 0x1e1   : > { %v947_v36 = vsel %vm945_vm2, %v940_v27, %v1991_v29  ;;  %v948_v31 = vsel %vm945_vm2, %v1993_v30, %v940_v27  ;;  %v2299_v62 = vsel %vm615_vm13, %v612_v38, %v2284_v48  ;;  %v638_v27 = vmul.f32 %v631_v28, %v2282_v6  ;;  %v2351_v29 = vld [vmem:[#allocation5 + $0x50] sm:$0xff] }
 0x1e2   : > { %v966_v56 = vmul.f32 %v953_v45, %v948_v31  ;;  %v967_v8 = vmul.f32 %v957_v50, %v947_v36  ;;  %v639_v41 = vmul.f32 %v635_v51, %v2299_v62  ;;  %v934_v38 = vmul.f32 %v924_v13, %v2016_v42  ;;  %v2316_v36 = vld [vmem:[#allocation5 + $0x40] sm:$0xff]  ;;  %v2327_v13 = vld [vmem:[#allocation5 + $0x48] sm:$0xff]  ;;  %v2353_v42 = vld [vmem:[#allocation5 + $0x58] sm:$0xff] }
 0x1e3   : > { %v933_v51 = vmul.f32 %v920_v5, %v2020_v43  ;;  %v693_v28 = vrot.slane %v2277_v12, %v2012_v40  ;;  %v598_v43 = vrot.slane %v2150_v2, %v2070_v4  ;;  %v602_v5 = vrot.slane %v2148_v0, %v2070_v4 }
 0x1e4   : > { %1228 = vmatprep.subr.mxu0 %v967_v8  ;;  %v2318_v45 = vpop.permute.xlu1 %574  ;;  %1321 = vmatprep.subr.mxu1 %v639_v41  ;;  %v2320_v50 = vpop.permute.xlu0 %576  ;;  %v816_v8 = vsel %vm813_vm7, %v2078_v11, %v2085_v20  ;;  %v817_v20 = vsel %vm813_vm7, %v2097_v33, %v2078_v11  ;;  %v2981_v33 = vrot.slane %v2219_v63, %v2083_v18  ;;  %vm1011_vm2 = vcmp.lt.s32.totalorder %v1982_v25, 119  ;;  %v3031_v25 = vld [vmem:[#allocation11_spill] sm:$0xff] }
 0x1e5   : > { %1229 = vmatpush1.msra.mxu0 %v966_v56  ;;  %1322 = vmatpush1.msra.mxu1 %v638_v27 }
 0x1e6   : > { %1230 = vmatprep.subr.mxu0 %v934_v38  ;;  %v2977_v38 = vrot.slane %v2219_v63, %v2043_v54 }
 0x1e7   : > { %1231 = vmatpush1.msra.mxu0 %v933_v51 }
 0x1e8   : > { %v901_v30 = vmul.f32 %v2977_v38, %v2047_v57  ;;  %v579_v27 = vpop.permute.xlu1 %578  ;;  %1232 = vmatprep.subr.mxu0 %v1923_v22  ;;  %v2359_v51 = vpop.permute.xlu0 %580  ;;  %v2978_v57 = vrot.slane %v2208_v53, %v2043_v54 }
 0x1e9   : > { %v2372_v31 = vsel %vm582_vm14, %v2320_v50, %v579_v27  ;;  %v2377_v22 = vsel %vm582_vm14, %v579_v27, %v2359_v51  ;;  %1233 = vmatpush1.msra.mxu0 %v1910_v16  ;;  %v2980_v27 = vrot.slane %v2208_v53, %v2070_v4 }
 0x1ea   : > { %v900_v38 = vmul.f32 %v2978_v57, %v2066_v1  ;;  %v2979_v1 = vrot.slane %v2219_v63, %v2070_v4  ;;  %v605_v56 = vmul.f32 %v598_v43, %v2372_v31  ;;  %v606_v41 = vmul.f32 %v602_v5, %v2377_v22  ;;  %1234 = vmatprep.subr.mxu0 %v901_v30 }
 0x1eb   : > { %v867_v16 = vmul.f32 %v2980_v27, %v2080_v14  ;;  %v835_v30 = vmul.f32 %v2981_v33, %v816_v8  ;;  %v784_v14 = vsel %vm780_vm8, %v2117_v47, %v2095_v32  ;;  %v627_v43 = vrot.slane %v2277_v12, %v2043_v54 }
 0x1ec   : > { %v868_v57 = vmul.f32 %v2979_v1, %v2072_v7  ;;  %v783_v7 = vsel %vm780_vm8, %v2095_v32, %v2105_v39  ;;  %1235 = vmatpush1.msra.mxu0 %v900_v38  ;;  %v2411_v39 = vpop.permute.xlu1 %541  ;;  %1323 = vmatprep.subr.mxu1 %v606_v41  ;;  %v2413_v5 = vpop.permute.xlu0 %543  ;;  %v2982_v38 = vrot.slane %v2208_v53, %v2083_v18 }
 0x1ed   : > { %v2422_v8 = vsel %vm747_vm9, %v2115_v46, %v2125_v55  ;;  %1324 = vmatpush1.msra.mxu1 %v605_v56  ;;  %v2983_v47 = vrot.slane %v2219_v63, %v2103_v37  ;;  %v565_v55 = vrot.slane %v2150_v2, %v2083_v18  ;;  %v2984_v56 = vrot.slane %v2208_v53, %v2103_v37 }
 0x1ee   : > { %1236 = vmatprep.subr.mxu0 %v868_v57  ;;  %v834_v27 = vmul.f32 %v2982_v38, %v817_v20  ;;  %v2433_v57 = vsel %vm747_vm9, %v2139_v61, %v2115_v46  ;;  %v569_v20 = vrot.slane %v2148_v0, %v2083_v18  ;;  %v623_v61 = vrot.slane %v2288_v24, %v2043_v54 }
 0x1ef   : > { %1237 = vmatpush1.msra.mxu0 %v867_v16  ;;  %v802_v41 = vmul.f32 %v2983_v47, %v783_v7  ;;  %v801_v16 = vmul.f32 %v2984_v56, %v784_v14  ;;  %v2446_v7 = vsel %vm714_vm10, %v2137_v60, %v2152_v3  ;;  %v2985_v33 = vrot.slane %v2219_v63, %v2123_v52  ;;  %v2989_v3 = vld [vmem:[#allocation22_spill] sm:$0xff] }
 0x1f0   : > { %1238 = vmatprep.subr.mxu0 %v835_v30  ;;  %v2460_v14 = vsel %vm714_vm10, %v2166_v10, %v2137_v60  ;;  %v546_v38 = vpop.permute.xlu1 %545  ;;  %v548_v47 = vpop.permute.xlu0 %547  ;;  %v2473_v56 = vsel %vm681_vm11, %v2164_v9, %v2175_v19  ;;  %v2492_v19 = vsel %vm681_vm11, %v2189_v35, %v2164_v9  ;;  %v594_v35 = vrot.slane %v2277_v12, %v2070_v4 }
 0x1f1   : > { %1239 = vmatpush1.msra.mxu0 %v834_v27  ;;  %v769_v30 = vmul.f32 %v2985_v33, %v2422_v8  ;;  %v2986_v27 = vrot.slane %v2208_v53, %v2123_v52  ;;  %v2478_v60 = vsel %vm549_vm15, %v2413_v5, %v546_v38  ;;  %v2482_v10 = vsel %vm549_vm15, %v546_v38, %v548_v47 }
 0x1f2   : > { %1240 = vmatprep.subr.mxu0 %v802_v41  ;;  %v736_v53 = vmul.f32 %v726_v58, %v2446_v7  ;;  %v572_v41 = vmul.f32 %v565_v55, %v2478_v60  ;;  %v573_v33 = vmul.f32 %v569_v20, %v2482_v10  ;;  %v2504_v58 = vsel %vm648_vm12, %v2187_v34, %v2201_v49 }
 0x1f3   : > { %v768_v63 = vmul.f32 %v2986_v27, %v2433_v57  ;;  %1241 = vmatpush1.msra.mxu0 %v801_v16  ;;  %v735_v16 = vmul.f32 %v722_v59, %v2460_v14  ;;  %v703_v55 = vmul.f32 %v693_v28, %v2473_v56  ;;  %v2987_v59 = vld [vmem:[#allocation20_spill] sm:$0xff]  ;;  %v590_v49 = vrot.slane %v2288_v24, %v2070_v4  ;;  %v2990_v28 = vld [vmem:[#allocation19_spill] sm:$0xff] }
 0x1f4   : > { %1242 = vmatprep.subr.mxu0 %v769_v30  ;;  %v2518_v20 = vsel %vm648_vm12, %v2987_v59, %v2187_v34  ;;  %v509_v30 = vpop.permute.xlu1 %508  ;;  %1325 = vmatprep.subr.mxu1 %v573_v33  ;;  %v511_v38 = vpop.permute.xlu0 %510  ;;  %v2988_v27 = vrot.slane %v2288_v24, %v2012_v40  ;;  %v2530_v9 = vsel %vm615_vm13, %v2990_v28, %v2989_v3 }
 0x1f5   : > { %1243 = vmatpush1.msra.mxu0 %v768_v63  ;;  %v561_v34 = vrot.slane %v2277_v12, %v2083_v18  ;;  %1326 = vmatpush1.msra.mxu1 %v572_v41  ;;  %v2542_v59 = vsel %vm615_vm13, %v2284_v48, %v2990_v28  ;;  %v532_v3 = vrot.slane %v2150_v2, %v2103_v37 }
 0x1f6   : > { %1244 = vmatprep.subr.mxu0 %v736_v53  ;;  %v702_v63 = vmul.f32 %v2988_v27, %v2492_v19  ;;  %v2991_v53 = vrot.slane %v2277_v12, %v2199_v44  ;;  %v536_v27 = vrot.slane %v2148_v0, %v2103_v37  ;;  %v2992_v41 = vrot.slane %v2288_v24, %v2199_v44 }
 0x1f7   : > { %1245 = vmatpush1.msra.mxu0 %v735_v16  ;;  %v557_v48 = vrot.slane %v2288_v24, %v2083_v18  ;;  %v2569_v28 = vsel %vm582_vm14, %v2359_v51, %v2318_v45  ;;  %v1099_v1 = vrot.slane %v2316_v36, %v2199_v44 }
 0x1f8   : > { %v670_v33 = vmul.f32 %v2991_v53, %v2504_v58  ;;  %1246 = vmatprep.subr.mxu0 %v703_v55  ;;  %v669_v16 = vmul.f32 %v2992_v41, %v2518_v20  ;;  %v2556_v53 = vsel %vm582_vm14, %v2318_v45, %v2320_v50  ;;  %v637_v55 = vmul.f32 %v627_v43, %v2530_v9  ;;  %v513_v41 = vpop.permute.xlu1 %512  ;;  %v515_v32 = vpop.permute.xlu0 %514 }
 0x1f9   : > { %1247 = vmatpush1.msra.mxu0 %v702_v63  ;;  %v528_v50 = vrot.slane %v2277_v12, %v2103_v37  ;;  %v636_v63 = vmul.f32 %v623_v61, %v2542_v59  ;;  %v2579_v43 = vsel %vm549_vm15, %v2411_v39, %v2413_v5  ;;  %v2583_v45 = vsel %vm516_vm0, %v511_v38, %v513_v41 }
 0x1fa   : > { %1248 = vmatprep.subr.mxu0 %v670_v33  ;;  %v2587_v51 = vsel %vm516_vm0, %v513_v41, %v515_v32  ;;  %v604_v33 = vmul.f32 %v594_v35, %v2556_v53  ;;  %v2593_v61 = vsel %vm549_vm15, %v548_v47, %v2411_v39  ;;  %v539_v46 = vmul.f32 %v532_v3, %v2583_v45 }
 0x1fb   : > { %1249 = vmatpush1.msra.mxu0 %v669_v16  ;;  %v540_v5 = vmul.f32 %v536_v27, %v2587_v51  ;;  %v603_v11 = vmul.f32 %v590_v49, %v2569_v28  ;;  %v2602_v16 = vsel %vm516_vm0, %v509_v30, %v511_v38  ;;  %v524_v35 = vrot.slane %v2288_v24, %v2103_v37 }
 0x1fc   : > { %1250 = vmatprep.subr.mxu0 %v637_v55  ;;  %v571_v39 = vmul.f32 %v561_v34, %v2579_v43  ;;  %v2609_v47 = vsel %vm516_vm0, %v515_v32, %v509_v30  ;;  %v474_v3 = vpop.permute.xlu1 %473  ;;  %v495_v49 = vrot.slane %v2277_v12, %v2123_v52  ;;  %v476_v27 = vpop.permute.xlu0 %475  ;;  %v1103_v38 = vrot.slane %v2327_v13, %v2199_v44 }
 0x1fd   : > { %1251 = vmatpush1.msra.mxu0 %v636_v63  ;;  %1327 = vmatprep.subr.mxu1 %v540_v5  ;;  %v570_v55 = vmul.f32 %v557_v48, %v2593_v61  ;;  %v2618_v41 = vsel %vm483_vm1, %v474_v3, %v476_v27  ;;  %v538_v32 = vmul.f32 %v528_v50, %v2602_v16 }
 0x1fe   : > { %1252 = vmatprep.subr.mxu0 %v604_v33  ;;  %1328 = vmatpush1.msra.mxu1 %v539_v46  ;;  %v499_v30 = vrot.slane %v2150_v2, %v2123_v52  ;;  %v491_v12 = vrot.slane %v2288_v24, %v2123_v52  ;;  %v503_v34 = vrot.slane %v2148_v0, %v2123_v52 }
 0x1ff   : > { %1253 = vmatpush1.msra.mxu0 %v603_v11  ;;  %v1107_v48 = vrot.slane %v2351_v29, %v2199_v44  ;;  %v1111_v63 = vrot.slane %v2353_v42, %v2199_v44  ;;  %v537_v46 = vmul.f32 %v524_v35, %v2609_v47  ;;  %v505_v50 = vmul.f32 %v495_v49, %v2618_v41 }
 0x200   : > { %1254 = vmatprep.subr.mxu0 %v571_v39  ;;  %v478_v33 = vpop.permute.xlu1 %477  ;;  %v480_v5 = vpop.permute.xlu0 %479  ;;  %v3024_v44 = vrot.slane %v2353_v42, %v2043_v54 }
 0x201   : > { %1255 = vmatpush1.msra.mxu0 %v570_v55  ;;  %v2645_v35 = vsel %vm483_vm1, %v476_v27, %v478_v33  ;;  %v2649_v55 = vsel %vm483_vm1, %v478_v33, %v480_v5  ;;  %v2653_v24 = vsel %vm483_vm1, %v480_v5, %v474_v3  ;;  %v2993_v27 = vld [vmem:[#allocation12_spill] sm:$0xff]  ;;  %v2994_v33 = vrot.slane %v2248_v15, %v2083_v18  ;;  %v2997_v5 = vld [vmem:[#allocation13_spill] sm:$0xff] }
 0x202   : > { %1256 = vmatprep.subr.mxu0 %v538_v32  ;;  %v506_v32 = vmul.f32 %v499_v30, %v2645_v35  ;;  %v504_v39 = vmul.f32 %v491_v12, %v2653_v24  ;;  %v507_v0 = vmul.f32 %v503_v34, %v2649_v55  ;;  %v2995_v30 = vrot.slane %v2238_v23, %v2083_v18 }
 0x203   : > { %1257 = vmatpush1.msra.mxu0 %v537_v46  ;;  %v1213_v2 = vmul.f32 %v2994_v33, %v2993_v27  ;;  %v2996_v34 = vrot.slane %v2255_v21, %v2083_v18  ;;  %v1043_v27 = vrot.slane %v2327_v13, %v2083_v18  ;;  %v2998_v3 = vrot.slane %v2250_v17, %v2083_v18 }
 0x204   : > { %1258 = vmatprep.subr.mxu0 %v505_v50  ;;  %v1212_v12 = vmul.f32 %v2995_v30, %v2422_v8  ;;  %v2680_v33 = vpop.permute.xlu1 %1003  ;;  %1329 = vmatprep.subr.mxu1 %v507_v0  ;;  %v2682_v46 = vpop.permute.xlu0 %1005  ;;  %v2999_v8 = vld [vmem:[#allocation14_spill] sm:$0xff]  ;;  %v3000_v30 = vrot.slane %v2248_v15, %v2103_v37  ;;  %v3001_v0 = vrot.slane %v2238_v23, %v2103_v37 }
 0x205   : > { %v1215_v50 = vmul.f32 %v2996_v34, %v2433_v57  ;;  %1259 = vmatpush1.msra.mxu0 %v504_v39  ;;  %v1214_v49 = vmul.f32 %v2998_v3, %v2997_v5  ;;  %1330 = vmatpush1.msra.mxu1 %v506_v32  ;;  %v3002_v34 = vrot.slane %v2255_v21, %v2103_v37 }
 0x206   : > { %v1193_v11 = vmul.f32 %v3000_v30, %v2999_v8  ;;  %1270 = vmatprep.subr.mxu0 %v1213_v2  ;;  %v1192_v39 = vmul.f32 %v3001_v0, %v2446_v7  ;;  %v1051_v5 = vrot.slane %v2353_v42, %v2083_v18  ;;  %v3003_v8 = vld [vmem:[#allocation15_spill] sm:$0xff]  ;;  %v3004_v2 = vrot.slane %v2250_v17, %v2103_v37  ;;  %v3005_v30 = vld [vmem:[#allocation16_spill] sm:$0xff] }
 0x207   : > { %v1195_v3 = vmul.f32 %v3002_v34, %v2460_v14  ;;  %1271 = vmatpush2.msra.mxu0 %v1212_v12  ;;  %1341 = vmatprep.subr.mxu1 %v1215_v50  ;;  %v3006_v57 = vrot.slane %v2248_v15, %v2123_v52  ;;  %v1019_v0 = vrot.slane %v2316_v36, %v2103_v37 }
 0x208   : > { %v1194_v32 = vmul.f32 %v3004_v2, %v3003_v8  ;;  %1272 = vmatprep.subr.mxu0 %v1193_v11  ;;  %1342 = vmatpush2.msra.mxu1 %v1214_v49  ;;  %v3007_v14 = vrot.slane %v2238_v23, %v2123_v52  ;;  %v3008_v50 = vrot.slane %v2255_v21, %v2123_v52  ;;  %v2724_v15 = vpop.permute.xlu1 %1007  ;;  %v3009_v11 = vld [vmem:[#allocation17_spill] sm:$0xff] }
 0x209   : > { %v1173_v7 = vmul.f32 %v3006_v57, %v3005_v30  ;;  %v1023_v8 = vrot.slane %v2327_v13, %v2103_v37  ;;  %1273 = vmatpush2.msra.mxu0 %v1192_v39  ;;  %1343 = vmatprep.subr.mxu1 %v1195_v3  ;;  %v2726_v57 = vpop.permute.xlu0 %1009  ;;  %v3010_v49 = vrot.slane %v2250_v17, %v2123_v52 }
 0x20a   : > { %v1172_v12 = vmul.f32 %v3007_v14, %v2473_v56  ;;  %v1175_v34 = vmul.f32 %v3008_v50, %v2492_v19  ;;  %v3011_v56 = vld [vmem:[#allocation18_spill] sm:$0xff]  ;;  %v3012_v2 = vrot.slane %v2327_v13, %v1985_v26  ;;  %v1027_v19 = vrot.slane %v2351_v29, %v2103_v37  ;;  %1344 = vmatpush2.msra.mxu1 %v1194_v32  ;;  %v3015_v50 = vld [vmem:[#allocation21_spill] sm:$0xff] }
 0x20b   : > { %v1174_v23 = vmul.f32 %v3010_v49, %v3009_v11  ;;  %1274 = vmatprep.subr.mxu0 %v1173_v7  ;;  %v3013_v39 = vrot.slane %v2316_v36, %v1985_v26  ;;  %v3014_v17 = vrot.slane %v2353_v42, %v1985_v26  ;;  %v1031_v14 = vrot.slane %v2353_v42, %v2103_v37 }
 0x20c   : > { %v1153_v21 = vmul.f32 %v3012_v2, %v3011_v56  ;;  %1275 = vmatpush2.msra.mxu0 %v1172_v12  ;;  %1345 = vmatprep.subr.mxu1 %v1175_v34  ;;  %v3016_v7 = vrot.slane %v2351_v29, %v1985_v26  ;;  %v3017_v11 = vrot.slane %v2327_v13, %v2012_v40  ;;  %v971_v56 = vpop.permute.xlu1 %970 }
 0x20d   : > { %v1152_v3 = vmul.f32 %v3013_v39, %v2504_v58  ;;  %v1155_v30 = vmul.f32 %v3014_v17, %v2518_v20  ;;  %1346 = vmatpush2.msra.mxu1 %v1174_v23  ;;  %v986_v20 = vrot.slane %v2316_v36, %v2123_v52  ;;  %v3018_v12 = vrot.slane %v2316_v36, %v2012_v40  ;;  %v973_v2 = vpop.permute.xlu0 %972 }
 0x20e   : > { %v1154_v32 = vmul.f32 %v3016_v7, %v3015_v50  ;;  %v1133_v58 = vmul.f32 %v3017_v11, %v2282_v6  ;;  %1276 = vmatprep.subr.mxu0 %v1153_v21  ;;  %v3019_v26 = vrot.slane %v2353_v42, %v2012_v40  ;;  %v990_v6 = vrot.slane %v2327_v13, %v2123_v52 }
 0x20f   : > { %v1132_v34 = vmul.f32 %v3018_v12, %v2530_v9  ;;  %1277 = vmatpush2.msra.mxu0 %v1152_v3  ;;  %1347 = vmatprep.subr.mxu1 %v1155_v30  ;;  %v3020_v23 = vrot.slane %v2351_v29, %v2012_v40  ;;  %v1113_v9 = vmul.f32 %v1103_v38, %v2372_v31  ;;  %v1595_v12 = vld [vmem:[%s1892_s5 + $0x8] sm:$0xff] }
 0x210   : > { %v1135_v49 = vmul.f32 %v3019_v26, %v2542_v59  ;;  %1278 = vmatprep.subr.mxu0 %v1133_v58  ;;  %1348 = vmatpush2.msra.mxu1 %v1154_v32  ;;  %v994_v59 = vrot.slane %v2351_v29, %v2123_v52  ;;  %v1112_v39 = vmul.f32 %v1099_v1, %v2556_v53 }
 0x211   : > { %v1134_v21 = vmul.f32 %v3020_v23, %v2299_v62  ;;  %v1115_v40 = vmul.f32 %v1111_v63, %v2569_v28  ;;  %1279 = vmatpush2.msra.mxu0 %v1132_v34  ;;  %v998_v62 = vrot.slane %v2353_v42, %v2123_v52  ;;  %v1114_v31 = vmul.f32 %v1107_v48, %v2377_v22 }
 0x212   : > { %1349 = vmatprep.subr.mxu1 %v1135_v49  ;;  %v3021_v38 = vrot.slane %v2316_v36, %v2043_v54  ;;  %v3022_v53 = vrot.slane %v2327_v13, %v2043_v54  ;;  %1280 = vmatprep.subr.mxu0 %v1113_v9  ;;  %v3023_v63 = vrot.slane %v2351_v29, %v2043_v54 }
 0x213   : > { %1350 = vmatpush2.msra.mxu1 %v1134_v21  ;;  %v1095_v22 = vmul.f32 %v3024_v44, %v2593_v61  ;;  %1281 = vmatpush2.msra.mxu0 %v1112_v39  ;;  %v3028_v61 = vrot.slane %v2353_v42, %v2070_v4  ;;  %v3029_v50 = vrot.slane %v2316_v36, %v2083_v18 }
 0x214   : > { %v1092_v1 = vmul.f32 %v3021_v38, %v2579_v43  ;;  %v1093_v28 = vmul.f32 %v3022_v53, %v2478_v60  ;;  %v1094_v3 = vmul.f32 %v3023_v63, %v2482_v10  ;;  %v3025_v43 = vrot.slane %v2316_v36, %v2070_v4  ;;  %1351 = vmatprep.subr.mxu1 %v1115_v40 }
 0x215   : > { %v3026_v60 = vrot.slane %v2327_v13, %v2070_v4  ;;  %v3027_v10 = vrot.slane %v2351_v29, %v2070_v4  ;;  %v1075_v30 = vmul.f32 %v3028_v61, %v2609_v47  ;;  %1352 = vmatpush2.msra.mxu1 %v1114_v31  ;;  %v1052_v7 = vmul.f32 %v3029_v50, %v2618_v41  ;;  %v977_v4 = vpop.permute.xlu0 %976 }
 0x216   : > { %v1072_v48 = vmul.f32 %v3025_v43, %v2602_v16  ;;  %v975_v16 = vpop.permute.xlu1 %974  ;;  %1282 = vmatprep.subr.mxu0 %v1093_v28  ;;  %1353 = vmatprep.subr.mxu1 %v1095_v22  ;;  %v3030_v47 = vrot.slane %v2351_v29, %v2083_v18  ;;  %v1055_v32 = vmul.f32 %v1051_v5, %v2653_v24 }
 0x217   : > { %v1073_v17 = vmul.f32 %v3026_v60, %v2583_v45  ;;  %v1074_v54 = vmul.f32 %v3027_v10, %v2587_v51  ;;  %v1053_v45 = vmul.f32 %v1043_v27, %v2645_v35  ;;  %v1013_v51 = vsel %vm1011_vm2, %v2682_v46, %v2724_v15  ;;  %1283 = vmatpush2.msra.mxu0 %v1092_v1 }
 0x218   : > { %v1054_v41 = vmul.f32 %v3030_v47, %v2649_v55  ;;  %v1014_v35 = vsel %vm1011_vm2, %v2680_v33, %v2682_v46  ;;  %v1015_v27 = vsel %vm1011_vm2, %v2726_v57, %v2680_v33  ;;  %1354 = vmatpush2.msra.mxu1 %v1094_v3  ;;  %v1012_v55 = vsel %vm1011_vm2, %v2724_v15, %v2726_v57 }
 0x219   : > { %1284 = vmatprep.subr.mxu0 %v1073_v17  ;;  %v980_v46 = vsel %vm978_vm3, %v973_v2, %v975_v16  ;;  %1355 = vmatprep.subr.mxu1 %v1075_v30  ;;  %v1033_v33 = vmul.f32 %v1023_v8, %v1013_v51  ;;  %v981_v11 = vsel %vm978_vm3, %v971_v56, %v973_v2 }
 0x21a   : > { %1285 = vmatpush2.msra.mxu0 %v1072_v48  ;;  %v982_v18 = vsel %vm978_vm3, %v977_v4, %v971_v56  ;;  %1356 = vmatpush2.msra.mxu1 %v1074_v54  ;;  %v1032_v24 = vmul.f32 %v1019_v0, %v1014_v35  ;;  %v1035_v5 = vmul.f32 %v1031_v14, %v1015_v27 }
 0x21b   : > { %1286 = vmatprep.subr.mxu0 %v1053_v45  ;;  %v979_v13 = vsel %vm978_vm3, %v975_v16, %v977_v4  ;;  %1357 = vmatprep.subr.mxu1 %v1055_v32  ;;  %v1034_v8 = vmul.f32 %v1027_v19, %v1012_v55  ;;  %v1000_v15 = vmul.f32 %v990_v6, %v980_v46  ;;  %v1594_v19 = vld [vmem:[%s1892_s5] sm:$0xff]  ;;  %s2891_s5 = scalar_lea.hbm %s2934_s6, %s1510_s16 }
 0x21c   : > { %1287 = vmatpush2.msra.mxu0 %v1052_v7  ;;  %1358 = vmatpush2.msra.mxu1 %v1054_v41  ;;  %v999_v0 = vmul.f32 %v986_v20, %v981_v11  ;;  %v1002_v57 = vmul.f32 %v998_v62, %v982_v18  ;;  %v1001_v42 = vmul.f32 %v994_v59, %v979_v13 }
 0x21d   : > { %1288 = vmatprep.subr.mxu0 %v1033_v33  ;;  %1359 = vmatprep.subr.mxu1 %v1035_v5  ;;  %v1221_v37 = vpop.permute.xlu1 %1220  ;;  %v1372_v14 = vcombine.high %v1594_v19, %v1594_v19  ;;  %v1373_v34 = vcombine.high %v1595_v12, %v1595_v12 }
 0x21e   : > { %1289 = vmatpush2.msra.mxu0 %v1032_v24  ;;  %1360 = vmatpush2.msra.mxu1 %v1034_v8 }
 0x21f   : > { %1290 = vmatprep.subr.mxu0 %v1000_v15  ;;  %1361 = vmatprep.subr.mxu1 %v1002_v57 }
 0x220   : > { %1291 = vmatpush2.msra.mxu0 %v999_v0  ;;  %1362 = vmatpush2.msra.mxu1 %v1001_v42 }
 0x221   : > { %1293 = vmatmul.mubr.f32.vlgmr.msra.gmra.mxu0 %v3031_v25  ;;  %1364 = vmatmul.mubr.f32.vlgmr.msra.gmra.mxu1 %v3031_v25 }
 0x2e1   : > { %v1294_v52 = vpop.f32.mrf.mxu0  ;;  %v1365_v36 = vpop.f32.mrf.mxu1 }
 0x2e2   : > { %v1295_v29 = vadd.f32 %v1294_v52, %v1221_v37  ;;  %v1366_v58 = vadd.f32 %v1365_v36, %v1221_v37 }
 0x2e3   : > { %v1296_v20 = vpop.f32.mrf.mxu0  ;;  %v1367_v56 = vpop.f32.mrf.mxu1 }
 0x2e4   : > { %v1376_v26 = vadd.f32 %v1594_v19, %v1295_v29  ;;  %v1297_v49 = vadd.f32 %v1296_v20, %v1221_v37  ;;  %v1368_v2 = vadd.f32 %v1367_v56, %v1221_v37  ;;  %v1378_v23 = vadd.f32 %v1595_v12, %v1366_v58 }
 0x2e6   : > { %v1377_v6 = vadd.f32 %v1372_v14, %v1297_v49  ;;  %v1379_v21 = vadd.f32 %v1373_v34, %v1368_v2 }
 0x2e8   : > { %v1384_v9 = vcombine.low %v1376_v26, %v1377_v6  ;;  %v1385_v59 = vcombine.low %v1378_v23, %v1379_v21 }
 0x2ea   : > { %1388 = vst [vmem:[%s282_s27] sm:$0xff] %v1384_v9  ;;  %1389 = vst [vmem:[%s282_s27 + $0x8] sm:$0xff] %v1385_v59 }
 0x2eb   : > { %1663 = shalt.err (!%p1660_p0)
}
 0x2ec   : > { %s1664_s30 = scalar_lea.hbm %s2891_s5, 256  ;;  %s1668_s8 = scalar_lea.hbm %s2934_s6, 512 }
 0x2ed   : > { %p1665_p5 = scmp.ne.s32.totalorder %s2891_s5, %s1664_s30  ;;  %p1669_p1 = scmp.lt.s32.totalorder %s2891_s5, %s2934_s6 }
 0x2ee   : > { %p1670_p4 = scmp.lt.s32.totalorder %s1668_s8, %s1664_s30 }
 0x2ef   : > { %p1666_p9 = pnand %p1665_p5, %p3032_p3 }
 0x2f0   : > { %p1671_p6 = por %p1670_p4, %p1669_p1 }
 0x2f1   : > { %p1667_p12 = pneg %p1666_p9 }
 0x2f3   : > { %p1672_p8 = pnand %p1671_p6, %p1667_p12 }
 0x2f5   : > { %1675 = shalt.err (!%p1672_p8)
}
 0x2f6   : > { %1517 = dma.vmem_to_hbm [thread:$0]  (%p3032_p3), %s1406_s29, 256, %s2891_s5, %s1391_s11  }
 0x2f7 PF: > { %s1417_s16 = sand.u32 1, %s1706_s21   ;;  %p3033_p11 = scmp.ne.s32.totalorder %s2954_s28, 0 }
 0x2f8   : > { %p3034_p7 = scmp.ge.s32.totalorder %s1718_s24, 2  ;;  %s1418_s27 = scalar_lea.sflag [#allocation4], %s1417_s16 }
 0x2fa   : > { %p1528_p10 = pnand %p3034_p7, %p3033_p11 }
 0x2fc   : > { %p1529_p2 = pneg %p1528_p10 }
 0x2fe   : > { %1701 = dma.done.wait (%p1529_p2), %s1418_s27, 256  }
 0x2ff   : > { %1703 = vsyncadd (%p1529_p2), %s1418_s27, 4294967040  ;;  %p20_p13 = scmp.ge.s32.totalorder %s1833_s9, 4   ;;  %s3035_s21 = smov %s1710_s22 }
 0x300   : > { %s3036_s22 = smov %s1714_s23  ;;  %s3037_s23 = smov %s1850_s17 }
 0x301   : > { %s3038_s24 = smov %s1833_s9  ;;  %22 = sbr.rel (!%p20_p13) target bundleno = 8 (0x8), region = 93 }
 0x306   :  { %1423 = vsyncpa [#allocation3], 1 }
 0x307   :  { %1425 = vsyncpa [#allocation3 + $0x1], 1 }
 0x308   :  { %1426 = vsyncpa [#allocation6], 1 }
 0x309   :  { %1427 = vsyncpa [#allocation4], 1 }
 0x30a   :  { %1429 = vsyncpa [#allocation4 + $0x1], 1 }

</bundles_post_ra>
